<compile_context>
chip_gen: v6e
topology: v6e:2x2x1
jax: 0.10.0
libtpu: 0.0.40
codegen_flags: <defaults>
</compile_context>

<pallas_src>
import functools

import jax
import jax.numpy as jnp
from jax import lax
from jax.experimental import pallas as pl
from jax.experimental.pallas import tpu as pltpu

# ---------------- model hyper-parameters (small, ViT-like) -------------------
BATCH = 2
IN_CH = 3
IMG = 16
PATCH = 8
N_PATCH = (IMG // PATCH) ** 2          # 4
SEQ = N_PATCH + 1                      # +1 cls token -> 5
EMBED = 32
HEADS = 2
HEAD_DIM = EMBED // HEADS              # 16
MLP_HIDDEN = 4 * EMBED                 # 128
DEPTH = 2
NUM_CLASSES = 10
LN_EPS = 1e-6
NEG_INF = -1e30                        # finite "minus infinity" (no NaNs)
CPP = IN_CH * PATCH * PATCH            # 192 pixels per patch row
LANES = 128

# ---------------- packed-slab layouts (shared by host packer & kernel) -------
# VEC slab: f32, (V_ROWS, 128).  All 1-D parameters live here as rows.
V_OFFSET = 0                           # rows 0:SEQ, cols 0:EMBED  (cls/pos/patch_b offsets)
V_BLOCK = SEQ                          # per-block base
V_PER_BLOCK = 10
#   +0 ln1_g, +1 ln1_b, +2 bq(pre-scaled), +3 bk, +4 bv, +5 proj_b,
#   +6 ln2_g, +7 ln2_b, +8 fc1_b (cols 0:MLP_HIDDEN), +9 fc2_b
V_FINAL = V_BLOCK + DEPTH * V_PER_BLOCK
#   +0 ln_f_g, +1 ln_f_b, +2 w_refine, +3 cls_b (cols >= NUM_CLASSES are NEG_INF)
V_ROWS = ((V_FINAL + 4 + 7) // 8) * 8  # pad row count to a multiple of 8

# WB slab: bf16, (WB_ROWS, EMBED).  All weight matrices with EMBED output cols.
WB_PATCH = 0                           # rows 0:CPP   -> patch embedding weight
WB_BLOCK = CPP
WB_PER_BLOCK = 4 * EMBED + MLP_HIDDEN  # wq | wk | wv | proj_w | fc2_w
WB_CLS = WB_BLOCK + DEPTH * WB_PER_BLOCK   # classifier weight (padded to EMBED cols)
WB_ROWS = WB_CLS + EMBED

# WH slab: bf16, (WH_ROWS, MLP_HIDDEN).  fc1 weights (128 output cols).
WH_ROWS = DEPTH * EMBED

# Output slab: one f32 (1, 128) row per image.
OUT_LOGITS = 0                         # cols 0:EMBED  (first NUM_CLASSES are real)
OUT_PROBS = EMBED                      # cols EMBED:2*EMBED
OUT_REFINED = 2 * EMBED                # cols 2*EMBED:3*EMBED


# ------------------------------ fused kernel ---------------------------------
def _miafex_kernel(xp_ref, wb_ref, wh_ref, vec_ref, out_ref, *, depth, heads):
    f32 = jnp.float32
    bf16 = jnp.bfloat16
    embed = EMBED
    head_dim = embed // heads

    def vrow(r, width=embed):          # static (1, width) slice of the vector slab
        return vec_ref[r:r + 1, 0:width]

    def ln(x, g, b):                   # LayerNorm in f32
        mu = jnp.mean(x, axis=-1, keepdims=True)
        xc = x - mu
        var = jnp.mean(xc * xc, axis=-1, keepdims=True)
        return xc * lax.rsqrt(var + LN_EPS) * g + b

    # Per-head 0/1 lane masks, generated in-kernel (no extra DMA).
    lane = lax.broadcasted_iota(jnp.int32, (1, embed), 1)
    head_masks = [
        jnp.logical_and(lane >= h * head_dim, lane < (h + 1) * head_dim).astype(f32)
        for h in range(heads)
    ]

    # Patch embedding.  Row 0 of xp is a zero "cls slot", and the cls token,
    # positional embedding and patch bias are pre-folded into the additive
    # offset rows, so one matmul + add yields the full token sequence.
    patch_w = wb_ref[WB_PATCH:WB_PATCH + CPP, :]                    # (CPP, D) bf16
    offset = vec_ref[V_OFFSET:V_OFFSET + SEQ, 0:embed]              # (SEQ, D) f32
    seq = jnp.dot(xp_ref[...], patch_w, preferred_element_type=f32) + offset

    for i in range(depth):
        vb = V_BLOCK + i * V_PER_BLOCK
        wbb = WB_BLOCK + i * WB_PER_BLOCK

        ln1_g, ln1_b = vrow(vb + 0), vrow(vb + 1)
        bq, bk, bv = vrow(vb + 2), vrow(vb + 3), vrow(vb + 4)
        pj_b = vrow(vb + 5)
        ln2_g, ln2_b = vrow(vb + 6), vrow(vb + 7)
        f1_b = vrow(vb + 8, MLP_HIDDEN)
        f2_b = vrow(vb + 9)

        wq = wb_ref[wbb + 0 * embed:wbb + 1 * embed, :]
        wk = wb_ref[wbb + 1 * embed:wbb + 2 * embed, :]
        wv = wb_ref[wbb + 2 * embed:wbb + 3 * embed, :]
        pj_w = wb_ref[wbb + 3 * embed:wbb + 4 * embed, :]
        f2_w = wb_ref[wbb + 4 * embed:wbb + 4 * embed + MLP_HIDDEN, :]
        f1_w = wh_ref[i * embed:(i + 1) * embed, :]                 # (D, MLP_HIDDEN)

        # --- attention sub-block (per-image: SEQ x SEQ scores, no batch mask) ---
        y = ln(seq, ln1_g, ln1_b)
        y_bf = y.astype(bf16)
        # 1/sqrt(head_dim) is folded into wq/bq on the host.
        q = jnp.dot(y_bf, wq, preferred_element_type=f32) + bq
        k = jnp.dot(y_bf, wk, preferred_element_type=f32) + bk
        v = jnp.dot(y_bf, wv, preferred_element_type=f32) + bv
        k_bf = k.astype(bf16)
        ctx = jnp.zeros_like(seq)
        for hm in head_masks:                       # unrolled; heads stay in VMEM
            qh = (q * hm).astype(bf16)              # masking q alone masks the scores
            s = lax.dot_general(qh, k_bf, (((1,), (1,)), ((), ())),
                                preferred_element_type=f32)         # (SEQ, SEQ)
            m = jnp.max(s, axis=-1, keepdims=True)
            e = jnp.exp(s - m)
            p = e * pl.reciprocal(jnp.sum(e, axis=-1, keepdims=True), approx=True)
            vh = (v * hm).astype(bf16)
            ctx = ctx + jnp.dot(p.astype(bf16), vh, preferred_element_type=f32)
        seq = seq + jnp.dot(ctx.astype(bf16), pj_w, preferred_element_type=f32) + pj_b

        # --- MLP sub-block ---
        y = ln(seq, ln2_g, ln2_b)
        hid = jnp.dot(y.astype(bf16), f1_w, preferred_element_type=f32) + f1_b
        # TODO(synk): timm's ViT uses exact (erf) GELU; tanh approximation is used
        # here (EUP-friendly on v5e) since the backbone weights are synthetic anyway.
        hid = jax.nn.gelu(hid, approximate=True)
        seq = seq + jnp.dot(hid.astype(bf16), f2_w, preferred_element_type=f32) + f2_b

    # Final LayerNorm + MIAFEx head (exact math).
    vf = V_FINAL
    seq = ln(seq, vrow(vf + 0), vrow(vf + 1))
    cls = seq[0:1, :]                                               # cls token row
    refined = cls * vrow(vf + 2)                                    # * w_refine

    cls_w = wb_ref[WB_CLS:WB_CLS + embed, :]                        # (D, D) zero-padded
    cls_b = vrow(vf + 3)                                            # pads are NEG_INF
    logits = jnp.dot(refined.astype(bf16), cls_w, preferred_element_type=f32) + cls_b
    # Exact softmax (pad columns carry -1e30 bias -> exp underflows to exactly 0).
    m = jnp.max(logits, axis=-1, keepdims=True)
    e = jnp.exp(logits - m)
    probs = e / jnp.sum(e, axis=-1, keepdims=True)

    out_ref[...] = jnp.zeros_like(out_ref)
    out_ref[:, OUT_LOGITS:OUT_LOGITS + embed] = logits
    out_ref[:, OUT_PROBS:OUT_PROBS + embed] = probs
    out_ref[:, OUT_REFINED:OUT_REFINED + embed] = refined


# --------------------------- parameter construction --------------------------
def init_params(key):
    def nrm(k, shape, scale=0.02):
        return (scale * jax.random.normal(k, shape)).astype(jnp.float32)

    keys = iter(jax.random.split(key, 64))
    params = {
        "patch_w": nrm(next(keys), (CPP, EMBED)),
        "patch_b": jnp.zeros((EMBED,), jnp.float32),
        "cls_token": nrm(next(keys), (1, 1, EMBED)),
        "pos_embed": nrm(next(keys), (1, SEQ, EMBED)),
        "ln_f_g": jnp.ones((EMBED,), jnp.float32),
        "ln_f_b": jnp.zeros((EMBED,), jnp.float32),
        # MIAFEx head (matches nn.Parameter(torch.ones(embed_dim)) + nn.Linear)
        "w_refine": jnp.ones((EMBED,), jnp.float32),
        "cls_w": nrm(next(keys), (EMBED, NUM_CLASSES)),
        "cls_b": jnp.zeros((NUM_CLASSES,), jnp.float32),
        "blocks": [],
    }
    for _ in range(DEPTH):
        params["blocks"].append({
            "ln1_g": jnp.ones((EMBED,), jnp.float32),
            "ln1_b": jnp.zeros((EMBED,), jnp.float32),
            "qkv_w": nrm(next(keys), (EMBED, 3 * EMBED)),
            "qkv_b": jnp.zeros((3 * EMBED,), jnp.float32),
            "proj_w": nrm(next(keys), (EMBED, EMBED)),
            "proj_b": jnp.zeros((EMBED,), jnp.float32),
            "ln2_g": jnp.ones((EMBED,), jnp.float32),
            "ln2_b": jnp.zeros((EMBED,), jnp.float32),
            "fc1_w": nrm(next(keys), (EMBED, MLP_HIDDEN)),
            "fc1_b": jnp.zeros((MLP_HIDDEN,), jnp.float32),
            "fc2_w": nrm(next(keys), (MLP_HIDDEN, EMBED)),
            "fc2_b": jnp.zeros((EMBED,), jnp.float32),
        })
    return params


# ------------------------ host-side parameter packing ------------------------
def _pack_params(params):
    f32, bf16 = jnp.float32, jnp.bfloat16
    scale = float(HEAD_DIM) ** -0.5

    vec = jnp.zeros((V_ROWS, LANES), f32)
    pos = params["pos_embed"][0]                                    # (SEQ, D)
    cls_row = params["cls_token"].reshape(1, EMBED) + pos[0:1]
    patch_rows = params["patch_b"].reshape(1, EMBED) + pos[1:]
    offset = jnp.concatenate([cls_row, patch_rows], axis=0)         # (SEQ, D)
    vec = vec.at[V_OFFSET:V_OFFSET + SEQ, 0:EMBED].set(offset)

    wb_rows = [params["patch_w"]]
    for i, blk in enumerate(params["blocks"]):
        vb = V_BLOCK + i * V_PER_BLOCK
        qkv_w, qkv_b = blk["qkv_w"], blk["qkv_b"]
        wq = qkv_w[:, 0:EMBED] * scale              # fold 1/sqrt(head_dim) into W_q/b_q
        wk = qkv_w[:, EMBED:2 * EMBED]
        wv = qkv_w[:, 2 * EMBED:3 * EMBED]
        vec = vec.at[vb + 0, 0:EMBED].set(blk["ln1_g"])
        vec = vec.at[vb + 1, 0:EMBED].set(blk["ln1_b"])
        vec = vec.at[vb + 2, 0:EMBED].set(qkv_b[0:EMBED] * scale)
        vec = vec.at[vb + 3, 0:EMBED].set(qkv_b[EMBED:2 * EMBED])
        vec = vec.at[vb + 4, 0:EMBED].set(qkv_b[2 * EMBED:3 * EMBED])
        vec = vec.at[vb + 5, 0:EMBED].set(blk["proj_b"])
        vec = vec.at[vb + 6, 0:EMBED].set(blk["ln2_g"])
        vec = vec.at[vb + 7, 0:EMBED].set(blk["ln2_b"])
        vec = vec.at[vb + 8, 0:MLP_HIDDEN].set(blk["fc1_b"])
        vec = vec.at[vb + 9, 0:EMBED].set(blk["fc2_b"])
        wb_rows += [wq, wk, wv, blk["proj_w"], blk["fc2_w"]]

    vf = V_FINAL
    cls_b_pad = jnp.full((EMBED,), NEG_INF, f32).at[0:NUM_CLASSES].set(params["cls_b"])
    vec = vec.at[vf + 0, 0:EMBED].set(params["ln_f_g"])
    vec = vec.at[vf + 1, 0:EMBED].set(params["ln_f_b"])
    vec = vec.at[vf + 2, 0:EMBED].set(params["w_refine"])
    vec = vec.at[vf + 3, 0:EMBED].set(cls_b_pad)

    cls_w_pad = jnp.zeros((EMBED, EMBED), f32).at[:, 0:NUM_CLASSES].set(params["cls_w"])
    wb_rows.append(cls_w_pad)
    wb = jnp.concatenate(wb_rows, axis=0).astype(bf16)              # (WB_ROWS, EMBED)
    wh = jnp.concatenate([blk["fc1_w"] for blk in params["blocks"]],
                         axis=0).astype(bf16)                       # (WH_ROWS, 128)
    return wb, wh, vec


# ------------------------------ model forward --------------------------------
@jax.jit
def miafex_forward(params, x):
    B, C, H, W = x.shape
    nH, nW = H // PATCH, W // PATCH
    wb, wh, vec = _pack_params(params)

    # NCHW -> per-patch pixel rows (Conv2d kernel=stride=patch order); a zero
    # "cls slot" row is prepended per image so one in-kernel matmul yields the
    # full token sequence in order.
    xp = x.reshape(B, C, nH, PATCH, nW, PATCH)
    xp = xp.transpose(0, 2, 4, 1, 3, 5).reshape(B, nH * nW, CPP)
    xp = jnp.concatenate([jnp.zeros((B, 1, CPP), xp.dtype), xp], axis=1)
    xp = xp.astype(jnp.bfloat16)                                    # (B, SEQ, CPP)

    out = pl.pallas_call(
        functools.partial(_miafex_kernel, depth=DEPTH, heads=HEADS),
        out_shape=jax.ShapeDtypeStruct((B, 1, LANES), jnp.float32),
        grid=(B,),
        in_specs=[
            pl.BlockSpec((None, SEQ, CPP), lambda b: (b, 0, 0)),          # per-image patches
            pl.BlockSpec((WB_ROWS, EMBED), lambda b: (0, 0)),             # bf16 weight slab
            pl.BlockSpec((WH_ROWS, MLP_HIDDEN), lambda b: (0, 0)),        # bf16 fc1 slab
            pl.BlockSpec((V_ROWS, LANES), lambda b: (0, 0)),              # f32 vector slab
        ],
        out_specs=pl.BlockSpec((None, 1, LANES), lambda b: (b, 0, 0)),    # one 128-lane row
        compiler_params=pltpu.CompilerParams(
            dimension_semantics=("parallel",)),     # batch axis -> both TCs on v7x
    )(xp, wb, wh, vec)

    out = out.reshape(B, LANES)
    logits = out[:, OUT_LOGITS:OUT_LOGITS + NUM_CLASSES]
    probs = out[:, OUT_PROBS:OUT_PROBS + NUM_CLASSES]
    refined = out[:, OUT_REFINED:OUT_REFINED + EMBED]
    return logits, probs, refined


# ----------------------------------- main -------------------------------------
if __name__ == "__main__":
    key = jax.random.PRNGKey(0)
    k_param, k_input = jax.random.split(key)
    params = init_params(k_param)
    x = jax.random.normal(k_input, (BATCH, IN_CH, IMG, IMG), dtype=jnp.float32)

    logits, probs, refined = miafex_forward(params, x)
    jax.block_until_ready((logits, probs, refined))

    assert logits.shape == (BATCH, NUM_CLASSES)
    assert probs.shape == (BATCH, NUM_CLASSES)
    assert refined.shape == (BATCH, EMBED)
    assert bool(jnp.all(jnp.isfinite(logits)))
    assert bool(jnp.all(jnp.isfinite(refined)))
    assert bool(jnp.all(probs >= 0.0))
    # final softmax uses exact division -> probabilities sum to 1 to f32 rounding
    assert bool(jnp.allclose(jnp.sum(probs, axis=-1), 1.0, atol=1e-4))

    print("KERNEL_OK")
</pallas_src>

<mosaic_0001>
module attributes {stable_mosaic.version = 11 : i64} {
  func.func @_miafex_kernel(%arg0: i32, %arg1: memref<1x5x192xbf16, #tpu.memory_space<vmem>>, %arg2: memref<736x32xbf16, #tpu.memory_space<vmem>>, %arg3: memref<64x128xbf16, #tpu.memory_space<vmem>>, %arg4: memref<32x128xf32, #tpu.memory_space<vmem>>, %arg5: memref<1x1x128xf32, #tpu.memory_space<vmem>>) attributes {dimension_semantics = [#tpu.dimension_semantics<parallel>], iteration_bounds = array<i64: 2>, scalar_prefetch = 0 : i64, scratch_operands = 0 : i64, tpu.core_type = #tpu.core_type<tc>, window_params = [{transform_indices = @transform_0, window_bounds = array<i64: 1, 5, 192>}, {pipeline_mode = #tpu.pipeline_mode<synchronous>, transform_indices = @transform_1, window_bounds = array<i64: 736, 32>}, {pipeline_mode = #tpu.pipeline_mode<synchronous>, transform_indices = @transform_2, window_bounds = array<i64: 64, 128>}, {pipeline_mode = #tpu.pipeline_mode<synchronous>, transform_indices = @transform_3, window_bounds = array<i64: 32, 128>}, {transform_indices = @transform_4, window_bounds = array<i64: 1, 1, 128>}]} {
    %0 = tpu.iota {dimensions = array<i32: 1>} : vector<1x32xi32>
    %c0_i32 = arith.constant 0 : i32
    %1 = vector.broadcast %c0_i32 : i32 to vector<1x32xi32>
    %2 = arith.cmpi sge, %0, %1 : vector<1x32xi32>
    %c16_i32 = arith.constant 16 : i32
    %3 = vector.broadcast %c16_i32 : i32 to vector<1x32xi32>
    %4 = arith.cmpi slt, %0, %3 : vector<1x32xi32>
    %5 = arith.andi %2, %4 : vector<1x32xi1>
    %6 = arith.extui %5 : vector<1x32xi1> to vector<1x32xi32>
    %7 = arith.sitofp %6 : vector<1x32xi32> to vector<1x32xf32>
    %c16_i32_0 = arith.constant 16 : i32
    %8 = vector.broadcast %c16_i32_0 : i32 to vector<1x32xi32>
    %9 = arith.cmpi sge, %0, %8 : vector<1x32xi32>
    %c32_i32 = arith.constant 32 : i32
    %10 = vector.broadcast %c32_i32 : i32 to vector<1x32xi32>
    %11 = arith.cmpi slt, %0, %10 : vector<1x32xi32>
    %12 = arith.andi %9, %11 : vector<1x32xi1>
    %13 = arith.extui %12 : vector<1x32xi1> to vector<1x32xi32>
    %14 = arith.sitofp %13 : vector<1x32xi32> to vector<1x32xf32>
    %c0 = arith.constant 0 : index
    %c0_1 = arith.constant 0 : index
    %15 = vector.load %arg2[%c0, %c0_1] : memref<736x32xbf16, #tpu.memory_space<vmem>>, vector<192x32xbf16>
    %c0_2 = arith.constant 0 : index
    %c0_3 = arith.constant 0 : index
    %16 = vector.load %arg4[%c0_2, %c0_3] : memref<32x128xf32, #tpu.memory_space<vmem>>, vector<5x32xf32>
    %c0_4 = arith.constant 0 : index
    %c0_5 = arith.constant 0 : index
    %c0_6 = arith.constant 0 : index
    %17 = vector.load %arg1[%c0_4, %c0_5, %c0_6] : memref<1x5x192xbf16, #tpu.memory_space<vmem>>, vector<1x5x192xbf16>
    %18 = vector.shape_cast %17 : vector<1x5x192xbf16> to vector<5x192xbf16>
    %cst = arith.constant dense<0.000000e+00> : vector<5x32xf32>
    %19 = tpu.matmul %18, %15, %cst {dimension_numbers = #tpu.dot_dimension_numbers<[1], [0], [0], [1], [0, 0, 1, 1], [], []>} : vector<5x192xbf16>, vector<192x32xbf16>, vector<5x32xf32> -> vector<5x32xf32>
    %20 = arith.addf %19, %16 : vector<5x32xf32>
    %c5 = arith.constant 5 : index
    %c0_7 = arith.constant 0 : index
    %21 = vector.load %arg4[%c5, %c0_7] : memref<32x128xf32, #tpu.memory_space<vmem>>, vector<1x32xf32>
    %c6 = arith.constant 6 : index
    %c0_8 = arith.constant 0 : index
    %22 = vector.load %arg4[%c6, %c0_8] : memref<32x128xf32, #tpu.memory_space<vmem>>, vector<1x32xf32>
    %c7 = arith.constant 7 : index
    %c0_9 = arith.constant 0 : index
    %23 = vector.load %arg4[%c7, %c0_9] : memref<32x128xf32, #tpu.memory_space<vmem>>, vector<1x32xf32>
    %c8 = arith.constant 8 : index
    %c0_10 = arith.constant 0 : index
    %24 = vector.load %arg4[%c8, %c0_10] : memref<32x128xf32, #tpu.memory_space<vmem>>, vector<1x32xf32>
    %c9 = arith.constant 9 : index
    %c0_11 = arith.constant 0 : index
    %25 = vector.load %arg4[%c9, %c0_11] : memref<32x128xf32, #tpu.memory_space<vmem>>, vector<1x32xf32>
    %c10 = arith.constant 10 : index
    %c0_12 = arith.constant 0 : index
    %26 = vector.load %arg4[%c10, %c0_12] : memref<32x128xf32, #tpu.memory_space<vmem>>, vector<1x32xf32>
    %c11 = arith.constant 11 : index
    %c0_13 = arith.constant 0 : index
    %27 = vector.load %arg4[%c11, %c0_13] : memref<32x128xf32, #tpu.memory_space<vmem>>, vector<1x32xf32>
    %c12 = arith.constant 12 : index
    %c0_14 = arith.constant 0 : index
    %28 = vector.load %arg4[%c12, %c0_14] : memref<32x128xf32, #tpu.memory_space<vmem>>, vector<1x32xf32>
    %c13 = arith.constant 13 : index
    %c0_15 = arith.constant 0 : index
    %29 = vector.load %arg4[%c13, %c0_15] : memref<32x128xf32, #tpu.memory_space<vmem>>, vector<1x128xf32>
    %c14 = arith.constant 14 : index
    %c0_16 = arith.constant 0 : index
    %30 = vector.load %arg4[%c14, %c0_16] : memref<32x128xf32, #tpu.memory_space<vmem>>, vector<1x32xf32>
    %c192 = arith.constant 192 : index
    %c0_17 = arith.constant 0 : index
    %31 = vector.load %arg2[%c192, %c0_17] : memref<736x32xbf16, #tpu.memory_space<vmem>>, vector<32x32xbf16>
    %c224 = arith.constant 224 : index
    %c0_18 = arith.constant 0 : index
    %32 = vector.load %arg2[%c224, %c0_18] : memref<736x32xbf16, #tpu.memory_space<vmem>>, vector<32x32xbf16>
    %c256 = arith.constant 256 : index
    %c0_19 = arith.constant 0 : index
    %33 = vector.load %arg2[%c256, %c0_19] : memref<736x32xbf16, #tpu.memory_space<vmem>>, vector<32x32xbf16>
    %c288 = arith.constant 288 : index
    %c0_20 = arith.constant 0 : index
    %34 = vector.load %arg2[%c288, %c0_20] : memref<736x32xbf16, #tpu.memory_space<vmem>>, vector<32x32xbf16>
    %c320 = arith.constant 320 : index
    %c0_21 = arith.constant 0 : index
    %35 = vector.load %arg2[%c320, %c0_21] : memref<736x32xbf16, #tpu.memory_space<vmem>>, vector<128x32xbf16>
    %c0_22 = arith.constant 0 : index
    %c0_23 = arith.constant 0 : index
    %36 = vector.load %arg3[%c0_22, %c0_23] : memref<64x128xbf16, #tpu.memory_space<vmem>>, vector<32x128xbf16>
    %cst_24 = arith.constant dense<0.000000e+00> : vector<5xf32>
    %37 = vector.multi_reduction <add>, %20, %cst_24 [1] : vector<5x32xf32> to vector<5xf32>
    %38 = vector.shape_cast %37 : vector<5xf32> to vector<5x1xf32>
    %cst_25 = arith.constant 3.200000e+01 : f32
    %39 = vector.broadcast %cst_25 : f32 to vector<5x1xf32>
    %40 = arith.divf %38, %39 : vector<5x1xf32>
    %41 = vector.broadcast %40 : vector<5x1xf32> to vector<5x32xf32>
    %42 = arith.subf %20, %41 : vector<5x32xf32>
    %43 = arith.mulf %42, %42 : vector<5x32xf32>
    %cst_26 = arith.constant dense<0.000000e+00> : vector<5xf32>
    %44 = vector.multi_reduction <add>, %43, %cst_26 [1] : vector<5x32xf32> to vector<5xf32>
    %45 = vector.shape_cast %44 : vector<5xf32> to vector<5x1xf32>
    %cst_27 = arith.constant 3.200000e+01 : f32
    %46 = vector.broadcast %cst_27 : f32 to vector<5x1xf32>
    %47 = arith.divf %45, %46 : vector<5x1xf32>
    %cst_28 = arith.constant 9.99999997E-7 : f32
    %48 = vector.broadcast %cst_28 : f32 to vector<5x1xf32>
    %49 = arith.addf %47, %48 : vector<5x1xf32>
    %50 = math.rsqrt %49 : vector<5x1xf32>
    %51 = vector.broadcast %50 : vector<5x1xf32> to vector<5x32xf32>
    %52 = arith.mulf %42, %51 : vector<5x32xf32>
    %53 = vector.broadcast %21 : vector<1x32xf32> to vector<5x32xf32>
    %54 = arith.mulf %52, %53 : vector<5x32xf32>
    %55 = vector.broadcast %22 : vector<1x32xf32> to vector<5x32xf32>
    %56 = arith.addf %54, %55 : vector<5x32xf32>
    %57 = arith.truncf %56 : vector<5x32xf32> to vector<5x32xbf16>
    %cst_29 = arith.constant dense<0.000000e+00> : vector<5x32xf32>
    %58 = tpu.matmul %57, %31, %cst_29 {dimension_numbers = #tpu.dot_dimension_numbers<[1], [0], [0], [1], [0, 0, 1, 1], [], []>} : vector<5x32xbf16>, vector<32x32xbf16>, vector<5x32xf32> -> vector<5x32xf32>
    %59 = vector.broadcast %23 : vector<1x32xf32> to vector<5x32xf32>
    %60 = arith.addf %58, %59 : vector<5x32xf32>
    %cst_30 = arith.constant dense<0.000000e+00> : vector<5x32xf32>
    %61 = tpu.matmul %57, %32, %cst_30 {dimension_numbers = #tpu.dot_dimension_numbers<[1], [0], [0], [1], [0, 0, 1, 1], [], []>} : vector<5x32xbf16>, vector<32x32xbf16>, vector<5x32xf32> -> vector<5x32xf32>
    %62 = vector.broadcast %24 : vector<1x32xf32> to vector<5x32xf32>
    %63 = arith.addf %61, %62 : vector<5x32xf32>
    %cst_31 = arith.constant dense<0.000000e+00> : vector<5x32xf32>
    %64 = tpu.matmul %57, %33, %cst_31 {dimension_numbers = #tpu.dot_dimension_numbers<[1], [0], [0], [1], [0, 0, 1, 1], [], []>} : vector<5x32xbf16>, vector<32x32xbf16>, vector<5x32xf32> -> vector<5x32xf32>
    %65 = vector.broadcast %25 : vector<1x32xf32> to vector<5x32xf32>
    %66 = arith.addf %64, %65 : vector<5x32xf32>
    %67 = arith.truncf %63 : vector<5x32xf32> to vector<5x32xbf16>
    %cst_32 = arith.constant 0.000000e+00 : f32
    %68 = vector.broadcast %cst_32 : f32 to vector<5x32xf32>
    %69 = vector.broadcast %7 : vector<1x32xf32> to vector<5x32xf32>
    %70 = arith.mulf %60, %69 : vector<5x32xf32>
    %71 = arith.truncf %70 : vector<5x32xf32> to vector<5x32xbf16>
    %cst_33 = arith.constant dense<0.000000e+00> : vector<5x5xf32>
    %72 = tpu.matmul %71, %67, %cst_33 {dimension_numbers = #tpu.dot_dimension_numbers<[1], [1], [0], [0], [0, 0, 1, 0], [], []>} : vector<5x32xbf16>, vector<5x32xbf16>, vector<5x5xf32> -> vector<5x5xf32>
    %cst_34 = arith.constant dense<0xFF800000> : vector<5xf32>
    %73 = vector.multi_reduction <maximumf>, %72, %cst_34 [1] : vector<5x5xf32> to vector<5xf32>
    %74 = vector.shape_cast %73 : vector<5xf32> to vector<5x1xf32>
    %75 = vector.broadcast %74 : vector<5x1xf32> to vector<5x5xf32>
    %76 = arith.subf %72, %75 : vector<5x5xf32>
    %77 = math.exp %76 : vector<5x5xf32>
    %cst_35 = arith.constant dense<0.000000e+00> : vector<5xf32>
    %78 = vector.multi_reduction <add>, %77, %cst_35 [1] : vector<5x5xf32> to vector<5xf32>
    %79 = vector.shape_cast %78 : vector<5xf32> to vector<5x1xf32>
    %80 = tpu.reciprocal %79 {approx = true} : vector<5x1xf32> -> vector<5x1xf32>
    %81 = vector.broadcast %80 : vector<5x1xf32> to vector<5x5xf32>
    %82 = arith.mulf %77, %81 : vector<5x5xf32>
    %83 = vector.broadcast %7 : vector<1x32xf32> to vector<5x32xf32>
    %84 = arith.mulf %66, %83 : vector<5x32xf32>
    %85 = arith.truncf %84 : vector<5x32xf32> to vector<5x32xbf16>
    %86 = arith.truncf %82 : vector<5x5xf32> to vector<5x5xbf16>
    %cst_36 = arith.constant dense<0.000000e+00> : vector<5x32xf32>
    %87 = tpu.matmul %86, %85, %cst_36 {dimension_numbers = #tpu.dot_dimension_numbers<[1], [0], [0], [1], [0, 0, 1, 1], [], []>} : vector<5x5xbf16>, vector<5x32xbf16>, vector<5x32xf32> -> vector<5x32xf32>
    %88 = arith.addf %68, %87 : vector<5x32xf32>
    %89 = vector.broadcast %14 : vector<1x32xf32> to vector<5x32xf32>
    %90 = arith.mulf %60, %89 : vector<5x32xf32>
    %91 = arith.truncf %90 : vector<5x32xf32> to vector<5x32xbf16>
    %cst_37 = arith.constant dense<0.000000e+00> : vector<5x5xf32>
    %92 = tpu.matmul %91, %67, %cst_37 {dimension_numbers = #tpu.dot_dimension_numbers<[1], [1], [0], [0], [0, 0, 1, 0], [], []>} : vector<5x32xbf16>, vector<5x32xbf16>, vector<5x5xf32> -> vector<5x5xf32>
    %cst_38 = arith.constant dense<0xFF800000> : vector<5xf32>
    %93 = vector.multi_reduction <maximumf>, %92, %cst_38 [1] : vector<5x5xf32> to vector<5xf32>
    %94 = vector.shape_cast %93 : vector<5xf32> to vector<5x1xf32>
    %95 = vector.broadcast %94 : vector<5x1xf32> to vector<5x5xf32>
    %96 = arith.subf %92, %95 : vector<5x5xf32>
    %97 = math.exp %96 : vector<5x5xf32>
    %cst_39 = arith.constant dense<0.000000e+00> : vector<5xf32>
    %98 = vector.multi_reduction <add>, %97, %cst_39 [1] : vector<5x5xf32> to vector<5xf32>
    %99 = vector.shape_cast %98 : vector<5xf32> to vector<5x1xf32>
    %100 = tpu.reciprocal %99 {approx = true} : vector<5x1xf32> -> vector<5x1xf32>
    %101 = vector.broadcast %100 : vector<5x1xf32> to vector<5x5xf32>
    %102 = arith.mulf %97, %101 : vector<5x5xf32>
    %103 = vector.broadcast %14 : vector<1x32xf32> to vector<5x32xf32>
    %104 = arith.mulf %66, %103 : vector<5x32xf32>
    %105 = arith.truncf %104 : vector<5x32xf32> to vector<5x32xbf16>
    %106 = arith.truncf %102 : vector<5x5xf32> to vector<5x5xbf16>
    %cst_40 = arith.constant dense<0.000000e+00> : vector<5x32xf32>
    %107 = tpu.matmul %106, %105, %cst_40 {dimension_numbers = #tpu.dot_dimension_numbers<[1], [0], [0], [1], [0, 0, 1, 1], [], []>} : vector<5x5xbf16>, vector<5x32xbf16>, vector<5x32xf32> -> vector<5x32xf32>
    %108 = arith.addf %88, %107 : vector<5x32xf32>
    %109 = arith.truncf %108 : vector<5x32xf32> to vector<5x32xbf16>
    %cst_41 = arith.constant dense<0.000000e+00> : vector<5x32xf32>
    %110 = tpu.matmul %109, %34, %cst_41 {dimension_numbers = #tpu.dot_dimension_numbers<[1], [0], [0], [1], [0, 0, 1, 1], [], []>} : vector<5x32xbf16>, vector<32x32xbf16>, vector<5x32xf32> -> vector<5x32xf32>
    %111 = arith.addf %20, %110 : vector<5x32xf32>
    %112 = vector.broadcast %26 : vector<1x32xf32> to vector<5x32xf32>
    %113 = arith.addf %111, %112 : vector<5x32xf32>
    %cst_42 = arith.constant dense<0.000000e+00> : vector<5xf32>
    %114 = vector.multi_reduction <add>, %113, %cst_42 [1] : vector<5x32xf32> to vector<5xf32>
    %115 = vector.shape_cast %114 : vector<5xf32> to vector<5x1xf32>
    %cst_43 = arith.constant 3.200000e+01 : f32
    %116 = vector.broadcast %cst_43 : f32 to vector<5x1xf32>
    %117 = arith.divf %115, %116 : vector<5x1xf32>
    %118 = vector.broadcast %117 : vector<5x1xf32> to vector<5x32xf32>
    %119 = arith.subf %113, %118 : vector<5x32xf32>
    %120 = arith.mulf %119, %119 : vector<5x32xf32>
    %cst_44 = arith.constant dense<0.000000e+00> : vector<5xf32>
    %121 = vector.multi_reduction <add>, %120, %cst_44 [1] : vector<5x32xf32> to vector<5xf32>
    %122 = vector.shape_cast %121 : vector<5xf32> to vector<5x1xf32>
    %cst_45 = arith.constant 3.200000e+01 : f32
    %123 = vector.broadcast %cst_45 : f32 to vector<5x1xf32>
    %124 = arith.divf %122, %123 : vector<5x1xf32>
    %cst_46 = arith.constant 9.99999997E-7 : f32
    %125 = vector.broadcast %cst_46 : f32 to vector<5x1xf32>
    %126 = arith.addf %124, %125 : vector<5x1xf32>
    %127 = math.rsqrt %126 : vector<5x1xf32>
    %128 = vector.broadcast %127 : vector<5x1xf32> to vector<5x32xf32>
    %129 = arith.mulf %119, %128 : vector<5x32xf32>
    %130 = vector.broadcast %27 : vector<1x32xf32> to vector<5x32xf32>
    %131 = arith.mulf %129, %130 : vector<5x32xf32>
    %132 = vector.broadcast %28 : vector<1x32xf32> to vector<5x32xf32>
    %133 = arith.addf %131, %132 : vector<5x32xf32>
    %134 = arith.truncf %133 : vector<5x32xf32> to vector<5x32xbf16>
    %cst_47 = arith.constant dense<0.000000e+00> : vector<5x128xf32>
    %135 = tpu.matmul %134, %36, %cst_47 {dimension_numbers = #tpu.dot_dimension_numbers<[1], [0], [0], [1], [0, 0, 1, 1], [], []>} : vector<5x32xbf16>, vector<32x128xbf16>, vector<5x128xf32> -> vector<5x128xf32>
    %136 = vector.broadcast %29 : vector<1x128xf32> to vector<5x128xf32>
    %137 = arith.addf %135, %136 : vector<5x128xf32>
    %138 = arith.mulf %137, %137 : vector<5x128xf32>
    %139 = arith.mulf %137, %138 : vector<5x128xf32>
    %cst_48 = arith.constant 4.471500e-02 : f32
    %140 = vector.broadcast %cst_48 : f32 to vector<5x128xf32>
    %141 = arith.mulf %140, %139 : vector<5x128xf32>
    %142 = arith.addf %137, %141 : vector<5x128xf32>
    %cst_49 = arith.constant 0.797884583 : f32
    %143 = vector.broadcast %cst_49 : f32 to vector<5x128xf32>
    %144 = arith.mulf %143, %142 : vector<5x128xf32>
    %145 = math.tanh %144 : vector<5x128xf32>
    %cst_50 = arith.constant 1.000000e+00 : f32
    %146 = vector.broadcast %cst_50 : f32 to vector<5x128xf32>
    %147 = arith.addf %146, %145 : vector<5x128xf32>
    %cst_51 = arith.constant 5.000000e-01 : f32
    %148 = vector.broadcast %cst_51 : f32 to vector<5x128xf32>
    %149 = arith.mulf %148, %147 : vector<5x128xf32>
    %150 = arith.mulf %137, %149 : vector<5x128xf32>
    %151 = arith.truncf %150 : vector<5x128xf32> to vector<5x128xbf16>
    %cst_52 = arith.constant dense<0.000000e+00> : vector<5x32xf32>
    %152 = tpu.matmul %151, %35, %cst_52 {dimension_numbers = #tpu.dot_dimension_numbers<[1], [0], [0], [1], [0, 0, 1, 1], [], []>} : vector<5x128xbf16>, vector<128x32xbf16>, vector<5x32xf32> -> vector<5x32xf32>
    %153 = arith.addf %113, %152 : vector<5x32xf32>
    %154 = vector.broadcast %30 : vector<1x32xf32> to vector<5x32xf32>
    %155 = arith.addf %153, %154 : vector<5x32xf32>
    %c15 = arith.constant 15 : index
    %c0_53 = arith.constant 0 : index
    %156 = vector.load %arg4[%c15, %c0_53] : memref<32x128xf32, #tpu.memory_space<vmem>>, vector<1x32xf32>
    %c16 = arith.constant 16 : index
    %c0_54 = arith.constant 0 : index
    %157 = vector.load %arg4[%c16, %c0_54] : memref<32x128xf32, #tpu.memory_space<vmem>>, vector<1x32xf32>
    %c17 = arith.constant 17 : index
    %c0_55 = arith.constant 0 : index
    %158 = vector.load %arg4[%c17, %c0_55] : memref<32x128xf32, #tpu.memory_space<vmem>>, vector<1x32xf32>
    %c18 = arith.constant 18 : index
    %c0_56 = arith.constant 0 : index
    %159 = vector.load %arg4[%c18, %c0_56] : memref<32x128xf32, #tpu.memory_space<vmem>>, vector<1x32xf32>
    %c19 = arith.constant 19 : index
    %c0_57 = arith.constant 0 : index
    %160 = vector.load %arg4[%c19, %c0_57] : memref<32x128xf32, #tpu.memory_space<vmem>>, vector<1x32xf32>
    %c20 = arith.constant 20 : index
    %c0_58 = arith.constant 0 : index
    %161 = vector.load %arg4[%c20, %c0_58] : memref<32x128xf32, #tpu.memory_space<vmem>>, vector<1x32xf32>
    %c21 = arith.constant 21 : index
    %c0_59 = arith.constant 0 : index
    %162 = vector.load %arg4[%c21, %c0_59] : memref<32x128xf32, #tpu.memory_space<vmem>>, vector<1x32xf32>
    %c22 = arith.constant 22 : index
    %c0_60 = arith.constant 0 : index
    %163 = vector.load %arg4[%c22, %c0_60] : memref<32x128xf32, #tpu.memory_space<vmem>>, vector<1x32xf32>
    %c23 = arith.constant 23 : index
    %c0_61 = arith.constant 0 : index
    %164 = vector.load %arg4[%c23, %c0_61] : memref<32x128xf32, #tpu.memory_space<vmem>>, vector<1x128xf32>
    %c24 = arith.constant 24 : index
    %c0_62 = arith.constant 0 : index
    %165 = vector.load %arg4[%c24, %c0_62] : memref<32x128xf32, #tpu.memory_space<vmem>>, vector<1x32xf32>
    %c448 = arith.constant 448 : index
    %c0_63 = arith.constant 0 : index
    %166 = vector.load %arg2[%c448, %c0_63] : memref<736x32xbf16, #tpu.memory_space<vmem>>, vector<32x32xbf16>
    %c480 = arith.constant 480 : index
    %c0_64 = arith.constant 0 : index
    %167 = vector.load %arg2[%c480, %c0_64] : memref<736x32xbf16, #tpu.memory_space<vmem>>, vector<32x32xbf16>
    %c512 = arith.constant 512 : index
    %c0_65 = arith.constant 0 : index
    %168 = vector.load %arg2[%c512, %c0_65] : memref<736x32xbf16, #tpu.memory_space<vmem>>, vector<32x32xbf16>
    %c544 = arith.constant 544 : index
    %c0_66 = arith.constant 0 : index
    %169 = vector.load %arg2[%c544, %c0_66] : memref<736x32xbf16, #tpu.memory_space<vmem>>, vector<32x32xbf16>
    %c576 = arith.constant 576 : index
    %c0_67 = arith.constant 0 : index
    %170 = vector.load %arg2[%c576, %c0_67] : memref<736x32xbf16, #tpu.memory_space<vmem>>, vector<128x32xbf16>
    %c32 = arith.constant 32 : index
    %c0_68 = arith.constant 0 : index
    %171 = vector.load %arg3[%c32, %c0_68] : memref<64x128xbf16, #tpu.memory_space<vmem>>, vector<32x128xbf16>
    %cst_69 = arith.constant dense<0.000000e+00> : vector<5xf32>
    %172 = vector.multi_reduction <add>, %155, %cst_69 [1] : vector<5x32xf32> to vector<5xf32>
    %173 = vector.shape_cast %172 : vector<5xf32> to vector<5x1xf32>
    %cst_70 = arith.constant 3.200000e+01 : f32
    %174 = vector.broadcast %cst_70 : f32 to vector<5x1xf32>
    %175 = arith.divf %173, %174 : vector<5x1xf32>
    %176 = vector.broadcast %175 : vector<5x1xf32> to vector<5x32xf32>
    %177 = arith.subf %155, %176 : vector<5x32xf32>
    %178 = arith.mulf %177, %177 : vector<5x32xf32>
    %cst_71 = arith.constant dense<0.000000e+00> : vector<5xf32>
    %179 = vector.multi_reduction <add>, %178, %cst_71 [1] : vector<5x32xf32> to vector<5xf32>
    %180 = vector.shape_cast %179 : vector<5xf32> to vector<5x1xf32>
    %cst_72 = arith.constant 3.200000e+01 : f32
    %181 = vector.broadcast %cst_72 : f32 to vector<5x1xf32>
    %182 = arith.divf %180, %181 : vector<5x1xf32>
    %cst_73 = arith.constant 9.99999997E-7 : f32
    %183 = vector.broadcast %cst_73 : f32 to vector<5x1xf32>
    %184 = arith.addf %182, %183 : vector<5x1xf32>
    %185 = math.rsqrt %184 : vector<5x1xf32>
    %186 = vector.broadcast %185 : vector<5x1xf32> to vector<5x32xf32>
    %187 = arith.mulf %177, %186 : vector<5x32xf32>
    %188 = vector.broadcast %156 : vector<1x32xf32> to vector<5x32xf32>
    %189 = arith.mulf %187, %188 : vector<5x32xf32>
    %190 = vector.broadcast %157 : vector<1x32xf32> to vector<5x32xf32>
    %191 = arith.addf %189, %190 : vector<5x32xf32>
    %192 = arith.truncf %191 : vector<5x32xf32> to vector<5x32xbf16>
    %cst_74 = arith.constant dense<0.000000e+00> : vector<5x32xf32>
    %193 = tpu.matmul %192, %166, %cst_74 {dimension_numbers = #tpu.dot_dimension_numbers<[1], [0], [0], [1], [0, 0, 1, 1], [], []>} : vector<5x32xbf16>, vector<32x32xbf16>, vector<5x32xf32> -> vector<5x32xf32>
    %194 = vector.broadcast %158 : vector<1x32xf32> to vector<5x32xf32>
    %195 = arith.addf %193, %194 : vector<5x32xf32>
    %cst_75 = arith.constant dense<0.000000e+00> : vector<5x32xf32>
    %196 = tpu.matmul %192, %167, %cst_75 {dimension_numbers = #tpu.dot_dimension_numbers<[1], [0], [0], [1], [0, 0, 1, 1], [], []>} : vector<5x32xbf16>, vector<32x32xbf16>, vector<5x32xf32> -> vector<5x32xf32>
    %197 = vector.broadcast %159 : vector<1x32xf32> to vector<5x32xf32>
    %198 = arith.addf %196, %197 : vector<5x32xf32>
    %cst_76 = arith.constant dense<0.000000e+00> : vector<5x32xf32>
    %199 = tpu.matmul %192, %168, %cst_76 {dimension_numbers = #tpu.dot_dimension_numbers<[1], [0], [0], [1], [0, 0, 1, 1], [], []>} : vector<5x32xbf16>, vector<32x32xbf16>, vector<5x32xf32> -> vector<5x32xf32>
    %200 = vector.broadcast %160 : vector<1x32xf32> to vector<5x32xf32>
    %201 = arith.addf %199, %200 : vector<5x32xf32>
    %202 = arith.truncf %198 : vector<5x32xf32> to vector<5x32xbf16>
    %cst_77 = arith.constant 0.000000e+00 : f32
    %203 = vector.broadcast %cst_77 : f32 to vector<5x32xf32>
    %204 = vector.broadcast %7 : vector<1x32xf32> to vector<5x32xf32>
    %205 = arith.mulf %195, %204 : vector<5x32xf32>
    %206 = arith.truncf %205 : vector<5x32xf32> to vector<5x32xbf16>
    %cst_78 = arith.constant dense<0.000000e+00> : vector<5x5xf32>
    %207 = tpu.matmul %206, %202, %cst_78 {dimension_numbers = #tpu.dot_dimension_numbers<[1], [1], [0], [0], [0, 0, 1, 0], [], []>} : vector<5x32xbf16>, vector<5x32xbf16>, vector<5x5xf32> -> vector<5x5xf32>
    %cst_79 = arith.constant dense<0xFF800000> : vector<5xf32>
    %208 = vector.multi_reduction <maximumf>, %207, %cst_79 [1] : vector<5x5xf32> to vector<5xf32>
    %209 = vector.shape_cast %208 : vector<5xf32> to vector<5x1xf32>
    %210 = vector.broadcast %209 : vector<5x1xf32> to vector<5x5xf32>
    %211 = arith.subf %207, %210 : vector<5x5xf32>
    %212 = math.exp %211 : vector<5x5xf32>
    %cst_80 = arith.constant dense<0.000000e+00> : vector<5xf32>
    %213 = vector.multi_reduction <add>, %212, %cst_80 [1] : vector<5x5xf32> to vector<5xf32>
    %214 = vector.shape_cast %213 : vector<5xf32> to vector<5x1xf32>
    %215 = tpu.reciprocal %214 {approx = true} : vector<5x1xf32> -> vector<5x1xf32>
    %216 = vector.broadcast %215 : vector<5x1xf32> to vector<5x5xf32>
    %217 = arith.mulf %212, %216 : vector<5x5xf32>
    %218 = vector.broadcast %7 : vector<1x32xf32> to vector<5x32xf32>
    %219 = arith.mulf %201, %218 : vector<5x32xf32>
    %220 = arith.truncf %219 : vector<5x32xf32> to vector<5x32xbf16>
    %221 = arith.truncf %217 : vector<5x5xf32> to vector<5x5xbf16>
    %cst_81 = arith.constant dense<0.000000e+00> : vector<5x32xf32>
    %222 = tpu.matmul %221, %220, %cst_81 {dimension_numbers = #tpu.dot_dimension_numbers<[1], [0], [0], [1], [0, 0, 1, 1], [], []>} : vector<5x5xbf16>, vector<5x32xbf16>, vector<5x32xf32> -> vector<5x32xf32>
    %223 = arith.addf %203, %222 : vector<5x32xf32>
    %224 = vector.broadcast %14 : vector<1x32xf32> to vector<5x32xf32>
    %225 = arith.mulf %195, %224 : vector<5x32xf32>
    %226 = arith.truncf %225 : vector<5x32xf32> to vector<5x32xbf16>
    %cst_82 = arith.constant dense<0.000000e+00> : vector<5x5xf32>
    %227 = tpu.matmul %226, %202, %cst_82 {dimension_numbers = #tpu.dot_dimension_numbers<[1], [1], [0], [0], [0, 0, 1, 0], [], []>} : vector<5x32xbf16>, vector<5x32xbf16>, vector<5x5xf32> -> vector<5x5xf32>
    %cst_83 = arith.constant dense<0xFF800000> : vector<5xf32>
    %228 = vector.multi_reduction <maximumf>, %227, %cst_83 [1] : vector<5x5xf32> to vector<5xf32>
    %229 = vector.shape_cast %228 : vector<5xf32> to vector<5x1xf32>
    %230 = vector.broadcast %229 : vector<5x1xf32> to vector<5x5xf32>
    %231 = arith.subf %227, %230 : vector<5x5xf32>
    %232 = math.exp %231 : vector<5x5xf32>
    %cst_84 = arith.constant dense<0.000000e+00> : vector<5xf32>
    %233 = vector.multi_reduction <add>, %232, %cst_84 [1] : vector<5x5xf32> to vector<5xf32>
    %234 = vector.shape_cast %233 : vector<5xf32> to vector<5x1xf32>
    %235 = tpu.reciprocal %234 {approx = true} : vector<5x1xf32> -> vector<5x1xf32>
    %236 = vector.broadcast %235 : vector<5x1xf32> to vector<5x5xf32>
    %237 = arith.mulf %232, %236 : vector<5x5xf32>
    %238 = vector.broadcast %14 : vector<1x32xf32> to vector<5x32xf32>
    %239 = arith.mulf %201, %238 : vector<5x32xf32>
    %240 = arith.truncf %239 : vector<5x32xf32> to vector<5x32xbf16>
    %241 = arith.truncf %237 : vector<5x5xf32> to vector<5x5xbf16>
    %cst_85 = arith.constant dense<0.000000e+00> : vector<5x32xf32>
    %242 = tpu.matmul %241, %240, %cst_85 {dimension_numbers = #tpu.dot_dimension_numbers<[1], [0], [0], [1], [0, 0, 1, 1], [], []>} : vector<5x5xbf16>, vector<5x32xbf16>, vector<5x32xf32> -> vector<5x32xf32>
    %243 = arith.addf %223, %242 : vector<5x32xf32>
    %244 = arith.truncf %243 : vector<5x32xf32> to vector<5x32xbf16>
    %cst_86 = arith.constant dense<0.000000e+00> : vector<5x32xf32>
    %245 = tpu.matmul %244, %169, %cst_86 {dimension_numbers = #tpu.dot_dimension_numbers<[1], [0], [0], [1], [0, 0, 1, 1], [], []>} : vector<5x32xbf16>, vector<32x32xbf16>, vector<5x32xf32> -> vector<5x32xf32>
    %246 = arith.addf %155, %245 : vector<5x32xf32>
    %247 = vector.broadcast %161 : vector<1x32xf32> to vector<5x32xf32>
    %248 = arith.addf %246, %247 : vector<5x32xf32>
    %cst_87 = arith.constant dense<0.000000e+00> : vector<5xf32>
    %249 = vector.multi_reduction <add>, %248, %cst_87 [1] : vector<5x32xf32> to vector<5xf32>
    %250 = vector.shape_cast %249 : vector<5xf32> to vector<5x1xf32>
    %cst_88 = arith.constant 3.200000e+01 : f32
    %251 = vector.broadcast %cst_88 : f32 to vector<5x1xf32>
    %252 = arith.divf %250, %251 : vector<5x1xf32>
    %253 = vector.broadcast %252 : vector<5x1xf32> to vector<5x32xf32>
    %254 = arith.subf %248, %253 : vector<5x32xf32>
    %255 = arith.mulf %254, %254 : vector<5x32xf32>
    %cst_89 = arith.constant dense<0.000000e+00> : vector<5xf32>
    %256 = vector.multi_reduction <add>, %255, %cst_89 [1] : vector<5x32xf32> to vector<5xf32>
    %257 = vector.shape_cast %256 : vector<5xf32> to vector<5x1xf32>
    %cst_90 = arith.constant 3.200000e+01 : f32
    %258 = vector.broadcast %cst_90 : f32 to vector<5x1xf32>
    %259 = arith.divf %257, %258 : vector<5x1xf32>
    %cst_91 = arith.constant 9.99999997E-7 : f32
    %260 = vector.broadcast %cst_91 : f32 to vector<5x1xf32>
    %261 = arith.addf %259, %260 : vector<5x1xf32>
    %262 = math.rsqrt %261 : vector<5x1xf32>
    %263 = vector.broadcast %262 : vector<5x1xf32> to vector<5x32xf32>
    %264 = arith.mulf %254, %263 : vector<5x32xf32>
    %265 = vector.broadcast %162 : vector<1x32xf32> to vector<5x32xf32>
    %266 = arith.mulf %264, %265 : vector<5x32xf32>
    %267 = vector.broadcast %163 : vector<1x32xf32> to vector<5x32xf32>
    %268 = arith.addf %266, %267 : vector<5x32xf32>
    %269 = arith.truncf %268 : vector<5x32xf32> to vector<5x32xbf16>
    %cst_92 = arith.constant dense<0.000000e+00> : vector<5x128xf32>
    %270 = tpu.matmul %269, %171, %cst_92 {dimension_numbers = #tpu.dot_dimension_numbers<[1], [0], [0], [1], [0, 0, 1, 1], [], []>} : vector<5x32xbf16>, vector<32x128xbf16>, vector<5x128xf32> -> vector<5x128xf32>
    %271 = vector.broadcast %164 : vector<1x128xf32> to vector<5x128xf32>
    %272 = arith.addf %270, %271 : vector<5x128xf32>
    %273 = arith.mulf %272, %272 : vector<5x128xf32>
    %274 = arith.mulf %272, %273 : vector<5x128xf32>
    %cst_93 = arith.constant 4.471500e-02 : f32
    %275 = vector.broadcast %cst_93 : f32 to vector<5x128xf32>
    %276 = arith.mulf %275, %274 : vector<5x128xf32>
    %277 = arith.addf %272, %276 : vector<5x128xf32>
    %cst_94 = arith.constant 0.797884583 : f32
    %278 = vector.broadcast %cst_94 : f32 to vector<5x128xf32>
    %279 = arith.mulf %278, %277 : vector<5x128xf32>
    %280 = math.tanh %279 : vector<5x128xf32>
    %cst_95 = arith.constant 1.000000e+00 : f32
    %281 = vector.broadcast %cst_95 : f32 to vector<5x128xf32>
    %282 = arith.addf %281, %280 : vector<5x128xf32>
    %cst_96 = arith.constant 5.000000e-01 : f32
    %283 = vector.broadcast %cst_96 : f32 to vector<5x128xf32>
    %284 = arith.mulf %283, %282 : vector<5x128xf32>
    %285 = arith.mulf %272, %284 : vector<5x128xf32>
    %286 = arith.truncf %285 : vector<5x128xf32> to vector<5x128xbf16>
    %cst_97 = arith.constant dense<0.000000e+00> : vector<5x32xf32>
    %287 = tpu.matmul %286, %170, %cst_97 {dimension_numbers = #tpu.dot_dimension_numbers<[1], [0], [0], [1], [0, 0, 1, 1], [], []>} : vector<5x128xbf16>, vector<128x32xbf16>, vector<5x32xf32> -> vector<5x32xf32>
    %288 = arith.addf %248, %287 : vector<5x32xf32>
    %289 = vector.broadcast %165 : vector<1x32xf32> to vector<5x32xf32>
    %290 = arith.addf %288, %289 : vector<5x32xf32>
    %c25 = arith.constant 25 : index
    %c0_98 = arith.constant 0 : index
    %291 = vector.load %arg4[%c25, %c0_98] : memref<32x128xf32, #tpu.memory_space<vmem>>, vector<1x32xf32>
    %c26 = arith.constant 26 : index
    %c0_99 = arith.constant 0 : index
    %292 = vector.load %arg4[%c26, %c0_99] : memref<32x128xf32, #tpu.memory_space<vmem>>, vector<1x32xf32>
    %cst_100 = arith.constant dense<0.000000e+00> : vector<5xf32>
    %293 = vector.multi_reduction <add>, %290, %cst_100 [1] : vector<5x32xf32> to vector<5xf32>
    %294 = vector.shape_cast %293 : vector<5xf32> to vector<5x1xf32>
    %cst_101 = arith.constant 3.200000e+01 : f32
    %295 = vector.broadcast %cst_101 : f32 to vector<5x1xf32>
    %296 = arith.divf %294, %295 : vector<5x1xf32>
    %297 = vector.broadcast %296 : vector<5x1xf32> to vector<5x32xf32>
    %298 = arith.subf %290, %297 : vector<5x32xf32>
    %299 = arith.mulf %298, %298 : vector<5x32xf32>
    %cst_102 = arith.constant dense<0.000000e+00> : vector<5xf32>
    %300 = vector.multi_reduction <add>, %299, %cst_102 [1] : vector<5x32xf32> to vector<5xf32>
    %301 = vector.shape_cast %300 : vector<5xf32> to vector<5x1xf32>
    %cst_103 = arith.constant 3.200000e+01 : f32
    %302 = vector.broadcast %cst_103 : f32 to vector<5x1xf32>
    %303 = arith.divf %301, %302 : vector<5x1xf32>
    %cst_104 = arith.constant 9.99999997E-7 : f32
    %304 = vector.broadcast %cst_104 : f32 to vector<5x1xf32>
    %305 = arith.addf %303, %304 : vector<5x1xf32>
    %306 = math.rsqrt %305 : vector<5x1xf32>
    %307 = vector.broadcast %306 : vector<5x1xf32> to vector<5x32xf32>
    %308 = arith.mulf %298, %307 : vector<5x32xf32>
    %309 = vector.broadcast %291 : vector<1x32xf32> to vector<5x32xf32>
    %310 = arith.mulf %308, %309 : vector<5x32xf32>
    %311 = vector.broadcast %292 : vector<1x32xf32> to vector<5x32xf32>
    %312 = arith.addf %310, %311 : vector<5x32xf32>
    %313 = vector.extract_strided_slice %312 {offsets = [0, 0], sizes = [1, 32], strides = [1, 1]} : vector<5x32xf32> to vector<1x32xf32>
    %c27 = arith.constant 27 : index
    %c0_105 = arith.constant 0 : index
    %314 = vector.load %arg4[%c27, %c0_105] : memref<32x128xf32, #tpu.memory_space<vmem>>, vector<1x32xf32>
    %315 = arith.mulf %313, %314 : vector<1x32xf32>
    %c704 = arith.constant 704 : index
    %c0_106 = arith.constant 0 : index
    %316 = vector.load %arg2[%c704, %c0_106] : memref<736x32xbf16, #tpu.memory_space<vmem>>, vector<32x32xbf16>
    %c28 = arith.constant 28 : index
    %c0_107 = arith.constant 0 : index
    %317 = vector.load %arg4[%c28, %c0_107] : memref<32x128xf32, #tpu.memory_space<vmem>>, vector<1x32xf32>
    %318 = arith.truncf %315 : vector<1x32xf32> to vector<1x32xbf16>
    %cst_108 = arith.constant dense<0.000000e+00> : vector<1x32xf32>
    %319 = tpu.matmul %318, %316, %cst_108 {dimension_numbers = #tpu.dot_dimension_numbers<[1], [0], [0], [1], [0, 0, 1, 1], [], []>} : vector<1x32xbf16>, vector<32x32xbf16>, vector<1x32xf32> -> vector<1x32xf32>
    %320 = arith.addf %319, %317 : vector<1x32xf32>
    %cst_109 = arith.constant dense<0xFF800000> : vector<1xf32>
    %321 = vector.multi_reduction <maximumf>, %320, %cst_109 [1] : vector<1x32xf32> to vector<1xf32>
    %322 = vector.shape_cast %321 : vector<1xf32> to vector<1x1xf32>
    %323 = vector.broadcast %322 : vector<1x1xf32> to vector<1x32xf32>
    %324 = arith.subf %320, %323 : vector<1x32xf32>
    %325 = math.exp %324 : vector<1x32xf32>
    %cst_110 = arith.constant dense<0.000000e+00> : vector<1xf32>
    %326 = vector.multi_reduction <add>, %325, %cst_110 [1] : vector<1x32xf32> to vector<1xf32>
    %327 = vector.shape_cast %326 : vector<1xf32> to vector<1x1xf32>
    %328 = vector.broadcast %327 : vector<1x1xf32> to vector<1x32xf32>
    %329 = arith.divf %325, %328 : vector<1x32xf32>
    %cst_111 = arith.constant 0.000000e+00 : f32
    %330 = vector.broadcast %cst_111 : f32 to vector<1x128xf32>
    %c0_112 = arith.constant 0 : index
    %c0_113 = arith.constant 0 : index
    %c0_114 = arith.constant 0 : index
    %331 = vector.load %arg5[%c0_112, %c0_113, %c0_114] : memref<1x1x128xf32, #tpu.memory_space<vmem>>, vector<1x1x128xf32>
    %332 = vector.shape_cast %331 : vector<1x1x128xf32> to vector<1x128xf32>
    %333 = vector.shape_cast %330 : vector<1x128xf32> to vector<1x1x128xf32>
    tpu.vector_store %arg5[%c0_112, %c0_113, %c0_114], %333 {strides = array<i32>} : memref<1x1x128xf32, #tpu.memory_space<vmem>>, vector<1x1x128xf32>,
    %c0_115 = arith.constant 0 : index
    %c0_116 = arith.constant 0 : index
    %c0_117 = arith.constant 0 : index
    %334 = vector.load %arg5[%c0_115, %c0_116, %c0_117] : memref<1x1x128xf32, #tpu.memory_space<vmem>>, vector<1x1x32xf32>
    %335 = vector.shape_cast %334 : vector<1x1x32xf32> to vector<1x32xf32>
    %336 = vector.shape_cast %320 : vector<1x32xf32> to vector<1x1x32xf32>
    tpu.vector_store %arg5[%c0_115, %c0_116, %c0_117], %336 {strides = array<i32>} : memref<1x1x128xf32, #tpu.memory_space<vmem>>, vector<1x1x32xf32>,
    %c0_118 = arith.constant 0 : index
    %c0_119 = arith.constant 0 : index
    %c32_120 = arith.constant 32 : index
    %337 = vector.load %arg5[%c0_118, %c0_119, %c32_120] : memref<1x1x128xf32, #tpu.memory_space<vmem>>, vector<1x1x32xf32>
    %338 = vector.shape_cast %337 : vector<1x1x32xf32> to vector<1x32xf32>
    %339 = vector.shape_cast %329 : vector<1x32xf32> to vector<1x1x32xf32>
    tpu.vector_store %arg5[%c0_118, %c0_119, %c32_120], %339 {strides = array<i32>} : memref<1x1x128xf32, #tpu.memory_space<vmem>>, vector<1x1x32xf32>,
    %c0_121 = arith.constant 0 : index
    %c0_122 = arith.constant 0 : index
    %c64 = arith.constant 64 : index
    %340 = vector.load %arg5[%c0_121, %c0_122, %c64] : memref<1x1x128xf32, #tpu.memory_space<vmem>>, vector<1x1x32xf32>
    %341 = vector.shape_cast %340 : vector<1x1x32xf32> to vector<1x32xf32>
    %342 = vector.shape_cast %315 : vector<1x32xf32> to vector<1x1x32xf32>
    tpu.vector_store %arg5[%c0_121, %c0_122, %c64], %342 {strides = array<i32>} : memref<1x1x128xf32, #tpu.memory_space<vmem>>, vector<1x1x32xf32>,
    return
  }
  func.func @transform_0(%arg0: i32) -> (i32, i32, i32) {
    %c0_i32 = arith.constant 0 : i32
    %c0_i32_0 = arith.constant 0 : i32
    %c0_i32_1 = arith.constant 0 : i32
    return %arg0, %c0_i32, %c0_i32_0 : i32, i32, i32
  }
  func.func @transform_1(%arg0: i32) -> (i32, i32) {
    %c0_i32 = arith.constant 0 : i32
    %c0_i32_0 = arith.constant 0 : i32
    %c0_i32_1 = arith.constant 0 : i32
    return %c0_i32, %c0_i32_0 : i32, i32
  }
  func.func @transform_2(%arg0: i32) -> (i32, i32) {
    %c0_i32 = arith.constant 0 : i32
    %c0_i32_0 = arith.constant 0 : i32
    %c0_i32_1 = arith.constant 0 : i32
    return %c0_i32, %c0_i32_0 : i32, i32
  }
  func.func @transform_3(%arg0: i32) -> (i32, i32) {
    %c0_i32 = arith.constant 0 : i32
    %c0_i32_0 = arith.constant 0 : i32
    %c0_i32_1 = arith.constant 0 : i32
    return %c0_i32, %c0_i32_0 : i32, i32
  }
  func.func @transform_4(%arg0: i32) -> (i32, i32, i32) {
    %c0_i32 = arith.constant 0 : i32
    %c0_i32_0 = arith.constant 0 : i32
    %c0_i32_1 = arith.constant 0 : i32
    return %arg0, %c0_i32, %c0_i32_0 : i32, i32, i32
  }
}

</mosaic_0001>

<bundles_post_ra>
// kernel: miafex_forward.1
= control target key start
LH: loop header
LB: loop body
LE: loop exit
PB: predicated region body
PF: predicated region fallthrough
CT: control target
= control target key end

     0   :  { %s2421_s15 = smov 0   ;;  %s2841_s0 = inlined_call_operand.vmem [shape: bf16[2,5,192], index: 0, kind: input, shape index: {}]   ;;  %s2842_s1 = inlined_call_operand.vmem [shape: bf16[736,32], index: 1, kind: input, shape index: {}]   ;;  %s2843_s2 = inlined_call_operand.vmem [shape: bf16[64,128], index: 2, kind: input, shape index: {}]   ;;  %s2844_s3 = inlined_call_operand.vmem [shape: f32[32,128], index: 3, kind: input, shape index: {}]   ;;  %s2845_s4 = inlined_call_operand.vmem [shape: f32[2,1,128], index: 4, kind: output, shape index: {}]  }
   0x1 LB: > { %s1933_s16 = sadd.s32 4294967295, %s2388_s15   ;;  %p1937_p0 = scmp.ge.s32.totalorder %s2388_s15, 1  ;;  %s2388_s15 = sphi %s2421_s15, %s14_s15  }
   0x2   : > { %p162_p1 = scmp.lt.s32.totalorder %s2388_s15, 3 }
   0x4   : > { %p163_p2 = pnand %p1937_p0, %p162_p1 }
   0x5   : > { %p186_p3 = scmp.lt.s32.totalorder (!%p163_p2), %s1933_s16, 1  ;;  %s2395_s30 = smov (!%p163_p2), 32  }
   0x6   : > { %166 = sbr.rel (%p163_p2) target bundleno = 5524 (0x1594), region = 36 }
   0xb   : > { %v2296_v0 = vld [vmem:[%s2842_s1 + $0x38] sm:$0xff]   ;;  %v2390_v1 = vmov 0   ;;  %v2297_v2 = vld [vmem:[%s2842_s1 + $0x30] sm:$0xff]   ;;  %s2847_s16 = smov (!%p186_p3, %s1933_s16), 1  ;;  %v2298_v3 = vld [vmem:[%s2842_s1 + $0x28] sm:$0xff]   ;;  %vm311_vm0 = vcmask 523264   ;;  %v195_v46 = vlaneseq }
   0xc   : > { %315 = vmatprep.subr.bf16.mxu0 %v2390_v1  ;;  %s2038_s23 = sshll.u32 %s2847_s16, 3  ;;  %v2299_v4 = vld [vmem:[%s2842_s1 + $0x20] sm:$0xff]   ;;  %v2300_v5 = vld [vmem:[%s2842_s1 + $0x18] sm:$0xff]   ;;  %v2301_v8 = vld [vmem:[%s2842_s1 + $0x10] sm:$0xff]   ;;  %vm401_vm1 = vcmask 258048   ;;  %s2484_s25 = scalar_lea.vmem %s2845_s4, %s2847_s16  ;;  %v2391_v29 = vmov 0.0  }
   0xd   : > { %316 = vmatpush1.bf16.msra.mxu0 %v2296_v0  ;;  %s190_s26 = scalar_lea.vmem %s2841_s0, %s2038_s23  ;;  %v2302_v9 = vld [vmem:[%s2842_s1 + $0x8] sm:$0xff]   ;;  %v2303_v10 = vld [vmem:[%s2842_s1] sm:$0xff]   ;;  %v2304_v11 = vld [vmem:[%s2842_s1 + $0x58] sm:$0xff]   ;;  %2106 = vmatprep.subr.bf16.mxu1 %v2391_v29  ;;  %1872 = vst [vmem:[%s2484_s25] sm:$0x1] %v2391_v29  ;;  %vm2392_vm2 = vmmov 0   ;;  %vm443_vm3 = vcmask 261120  }
   0xe   : > { %317 = vmatprep.subr.bf16.mxu0 %v2390_v1  ;;  %v232_v6 = vld [vmem:[%s190_s26] sm:$0x77]  ;;  %v2305_v12 = vld [vmem:[%s2842_s1 + $0x50] sm:$0xff]   ;;  %v2306_v13 = vld [vmem:[%s2842_s1 + $0x48] sm:$0xff]   ;;  %2110 = vmatprep.mubr.msk.bf16.mxu1 %vm2392_vm2, %v2391_v29  ;;  %v196_v49 = vand.u32 127, %v195_v46  ;;  %vm726_vm8 = vcmask 1041408  }
   0xf   : > { %v1943_v7 = vcombine.high %v232_v6, %v232_v6  ;;  %v2307_v14 = vld [vmem:[%s2842_s1 + $0x40] sm:$0xff]   ;;  %v1942_v15 = vcombine.low %v232_v6, %v232_v6  ;;  %v2310_v28 = vld [vmem:[%s2842_s1 + $0x68] sm:$0xff]   ;;  %v2312_v40 = vld [vmem:[%s2842_s1 + $0x78] sm:$0xff]   ;;  %vm727_vm9 = vcmask 1042432   ;;  %vm648_vm10 = vcmask 36864   ;;  %s2394_s16 = smov 64  }
  0x10   : > { %v231_v16 = vld [vmem:[%s2844_s3] sm:$0x1f]  ;;  %2107 = vmatpush3.bf16.msra.mxu1 %v2310_v28  ;;  %v1957_v35 = vld [vmem:[%s2844_s3 + $0x5] ss:$0 sm:$0xff]  ;;  %v1958_v37 = vld [vmem:[%s2844_s3 + $0x6] ss:$0 sm:$0xff] }
  0x11   : > { %318 = vmatpush1.bf16.msra.mxu0 %v2297_v2  ;;  %1956 = vmatprep.mubr.msk.bf16.mxu0 %vm311_vm0, %v1943_v7  ;;  %v2311_v30 = vld [vmem:[%s2842_s1 + $0x60] sm:$0xff]   ;;  %v2313_v42 = vld [vmem:[%s2842_s1 + $0x70] sm:$0xff]   ;;  %v2314_v43 = vld [vmem:[%s2842_s1 + $0x88] sm:$0xff]   ;;  %vm198_vm4 = vcmp.lt.s32.totalorder %v196_v49, 16  ;;  %vm202_vm5 = vcmp.ge.s32.totalorder %v196_v49, 16  ;;  %vm203_vm6 = vcmp.lt.s32.totalorder %v196_v49, 32 }
  0x12   : > { %319 = vmatprep.subr.bf16.mxu0 %v2390_v1  ;;  %2108 = vmatprep.subr.bf16.mxu1 %v2391_v29  ;;  %v2315_v44 = vld [vmem:[%s2842_s1 + $0x80] sm:$0xff]   ;;  %v1963_v51 = vld [vmem:[%s2844_s3 + $0x8] ss:$0 sm:$0xff]  ;;  %v2540_v58 = vsel %vm198_vm4, 1.0, %v2391_v29  ;;  %v1967_v62 = vld [vmem:[%s2844_s3 + $0x9] ss:$0 sm:$0xff] }
  0x13   : > { %v1959_v52 = vld [vmem:[%s2844_s3 + $0x7] ss:$0 sm:$0xff]  ;;  %vm204_vm7 = vmand %vm202_vm5, %vm203_vm6  ;;  %v2393_v7 = vmov 65535   ;;  %vm722_vm11 = vcmask 39936   ;;  %v2317_v49 = vld [vmem:[%s2842_s1 + $0x90] sm:$0xff]   ;;  %vm1860_vm12 = vcmask 253952  }
  0x14   : > { %2109 = vmatpush3.bf16.msra.mxu1 %v2311_v30  ;;  %vm1878_vm13 = vcmask 516352   ;;  %vm1884_vm14 = vcmask 778752  }
  0x15   : > { %320 = vmatpush1.bf16.msra.mxu0 %v2298_v3  ;;  %2114 = vmatprep.subr.bf16.mxu1 %v2391_v29  ;;  %v2549_v3 = vsel %vm204_vm7, 1.0, %v2391_v29 }
  0x16   : > { %321 = vmatprep.subr.bf16.mxu0 %v2390_v1 }
  0x19   : > { %322 = vmatpush1.bf16.msra.mxu0 %v2299_v4 }
  0x1a   : > { %323 = vmatprep.subr.bf16.mxu0 %v2390_v1 }
  0x1d   : > { %324 = vmatpush1.bf16.msra.mxu0 %v2300_v5 }
  0x1e   : > { %325 = vmatprep.subr.bf16.mxu0 %v2390_v1 }
  0x21   : > { %326 = vmatpush1.bf16.msra.mxu0 %v2301_v8  ;;  %v728_v8 = vsel %vm726_vm8, 4294967295, %v2393_v7 }
  0x22   : > { %327 = vmatprep.subr.bf16.mxu0 %v2390_v1 }
  0x25   : > { %328 = vmatpush1.bf16.msra.mxu0 %v2302_v9 }
  0x26   : > { %329 = vmatprep.subr.bf16.mxu0 %v2390_v1 }
  0x29   : > { %330 = vmatpush1.bf16.msra.mxu0 %v2303_v10 }
  0x2a   : > { %339 = vmatprep.subr.bf16.mxu0 %v2390_v1 }
  0x2d   : > { %340 = vmatpush2.bf16.msra.mxu0 %v2304_v11 }
  0x2e   : > { %341 = vmatprep.subr.bf16.mxu0 %v2390_v1 }
  0x31   : > { %342 = vmatpush2.bf16.msra.mxu0 %v2305_v12  ;;  %v2557_v12 = vsel %vm727_vm9, %v728_v8, 0 }
  0x32   : > { %343 = vmatprep.subr.bf16.mxu0 %v2390_v1 }
  0x35   : > { %344 = vmatpush2.bf16.msra.mxu0 %v2306_v13 }
  0x36   : > { %345 = vmatprep.subr.bf16.mxu0 %v2390_v1 }
  0x39   : > { %346 = vmatpush2.bf16.msra.mxu0 %v2307_v14 }
  0x3a   : > { %2162 = vmatprep.subr.bf16.mxu0 %v2391_v29 }
  0x3c   : > { %348 = vmatmul.mubr.bf16.vlgmr.msra.gmra.mxu0 %v1942_v15 }
  0x3d   : > { %2166 = vmatprep.mubr.msk.bf16.mxu0 %vm2392_vm2, %v2391_v29 }
  0xfc   : > { %v349_v17 = vpop.f32.mrf.mxu0 }
  0xfd   : > { %v2474_v18 = vadd.f32 %v349_v17, %v231_v16 }
  0xfe   : > { %v351_v19 = vpop.f32.mrf.mxu0 }
  0xff   : > { %v402_v20 = vsel %vm401_vm1, %v2474_v18, 0.0 }
 0x100   : > { %v352_v21 = vpop.f32.mrf.mxu0  ;;  %403 = vadd.xlane.f32.xlu0 %v402_v20 }
 0x102   : > { %v353_v22 = vpop.f32.mrf.mxu0 }
 0x189   : > { %v404_v23 = vpop.xlane.xlu0 %403 }
 0x18a   : > { %v406_v24 = vmul.f32 0.03125, %v404_v23 }
 0x18c   : > { %v407_v25 = vsub.f32 %v2474_v18, %v406_v24 }
 0x18e   : > { %v408_v26 = vmul.f32 %v407_v25, %v407_v25 }
 0x190   : > { %v409_v27 = vsel %vm401_vm1, %v408_v26, 0.0 }
 0x191   : > { %410 = vadd.xlane.f32.xlu0 %v409_v27 }
 0x21a   : > { %v411_v31 = vpop.xlane.xlu0 %410 }
 0x21b   : > { %v412_v32 = vmul.f32 0.03125, %v411_v31 }
 0x21d   : > { %v413_v33 = vadd.f32 1e-06, %v412_v32 }
 0x21f   : > { %2348 = vrsqrt.f32 %v413_v33 }
 0x22c   : > { %v2349_v34 = vpop.eup %2348 }
 0x22d   : > { %v415_v36 = vmul.f32 %v2349_v34, %v407_v25 }
 0x22f   : > { %v420_v38 = vmul.f32 %v1957_v35, %v415_v36 }
 0x231   : > { %v425_v39 = vadd.f32 %v1958_v37, %v420_v38 }
 0x233   : > { %v426_v41 = vpack.c.bf16 %v425_v39, %v425_v39 }
 0x235   : > { %2111 = vmatmul.mubr.msk.bf16.vlgmr.msra.gmra.mxu1 %vm443_vm3, %v426_v41 }
 0x236   : > { %2115 = vmatpush3.bf16.msra.mxu1 %v2312_v40  ;;  %2118 = vmatprep.mubr.msk.bf16.mxu1 %vm2392_vm2, %v2391_v29 }
 0x237   : > { %2116 = vmatprep.subr.bf16.mxu1 %v2391_v29 }
 0x23a   : > { %2117 = vmatpush3.bf16.msra.mxu1 %v2313_v42 }
 0x23b   : > { %2122 = vmatprep.subr.bf16.mxu1 %v2391_v29 }
 0x23d   : > { %2119 = vmatmul.mubr.msk.bf16.vlgmr.msra.gmra.mxu1 %vm443_vm3, %v426_v41 }
 0x23e   : > { %2123 = vmatpush3.bf16.msra.mxu1 %v2314_v43  ;;  %2126 = vmatprep.mubr.msk.bf16.mxu1 %vm2392_vm2, %v2391_v29 }
 0x23f   : > { %2124 = vmatprep.subr.bf16.mxu1 %v2391_v29 }
 0x242   : > { %2125 = vmatpush3.bf16.msra.mxu1 %v2315_v44 }
 0x243   : > { %2130 = vmatprep.subr.bf16.mxu1 %v2391_v29 }
 0x245   : > { %2127 = vmatmul.mubr.msk.bf16.vlgmr.msra.gmra.mxu1 %vm443_vm3, %v426_v41 }
 0x246   : > { %2132 = vmatprep.mubr.msk.bf16.mxu1 %vm2392_vm2, %v2391_v29 }
 0x2f5   : > { %v481_v45 = vpop.f32.mrf.mxu1 }
 0x2f6   : > { %v482_v56 = vadd.f32 %v1959_v52, %v481_v45 }
 0x2f7   : > { %v2112_v47 = vpop.f32.mrf.mxu1 }
 0x2f8   : > { %v600_v63 = vmul.f32 %v2540_v58, %v482_v56  ;;  %v663_v10 = vmul.f32 %v2549_v3, %v482_v56 }
 0x2f9   : > { %v484_v48 = vpop.f32.mrf.mxu1 }
 0x2fa   : > { %v601_v4 = vpack.c.bf16 %v600_v63, %v600_v63  ;;  %v664_v13 = vpack.c.bf16 %v663_v10, %v663_v10  ;;  %v2316_v48 = vld [vmem:[%s2842_s1 + $0x98] sm:$0xff]  }
 0x2fb   : > { %v2113_v50 = vpop.f32.mrf.mxu1 }
 0x2fd   : > { %v537_v53 = vpop.f32.mrf.mxu1 }
 0x2fe   : > { %v538_v54 = vadd.f32 %v1963_v51, %v537_v53 }
 0x2ff   : > { %v2120_v55 = vpop.f32.mrf.mxu1 }
 0x300   : > { %v599_v57 = vpack.c.bf16 %v538_v54, %v538_v54 }
 0x301   : > { %v540_v59 = vpop.f32.mrf.mxu1 }
 0x302   : > { %v606_v60 = vsel %vm443_vm3, %v599_v57, 0 }
 0x303   : > { %v2121_v61 = vpop.f32.mrf.mxu1  ;;  %2131 = vmatpush3.bf16.xpose.msra.mxu1 %v606_v60 }
 0x304   : > { %2136 = vmatprep.subr.bf16.mxu1 %v2391_v29  ;;  %v1978_v61 = vld [vmem:[%s2844_s3 + $0xa] ss:$0 sm:$0xff] }
 0x305   : > { %v593_v0 = vpop.f32.mrf.mxu1 }
 0x306   : > { %v594_v1 = vadd.f32 %v1967_v62, %v593_v0 }
 0x307   : > { %v2128_v2 = vpop.f32.mrf.mxu1 }
 0x308   : > { %v719_v5 = vmul.f32 %v2549_v3, %v594_v1  ;;  %v660_v39 = vmul.f32 %v2540_v58, %v594_v1 }
 0x309   : > { %v596_v6 = vpop.f32.mrf.mxu1 }
 0x30a   : > { %2133 = vmatmul.mubr.msk.bf16.vlgmr.msra.gmra.mxu1 %vm443_vm3, %v601_v4  ;;  %v720_v11 = vpack.c.bf16 %v719_v5, %v719_v5  ;;  %v661_v41 = vpack.c.bf16 %v660_v39, %v660_v39 }
 0x30b   : > { %v2129_v9 = vpop.f32.mrf.mxu1  ;;  %2137 = vmatpush3.bf16.xpose.msra.mxu1 %v606_v60  ;;  %2138 = vmatprep.mubr.msk.bf16.mxu1 %vm2392_vm2, %v2391_v29 }
 0x30c   : > { %2142 = vmatprep.subr.bf16.mxu1 %v2391_v29  ;;  %v731_v14 = vand.u32 %v2557_v12, %v720_v11  ;;  %v777_v45 = vand.u32 %v2557_v12, %v661_v41  ;;  %v2319_v11 = vld [vmem:[%s2843_s2] sm:$0xff]  }
 0x312   : > { %2139 = vmatmul.mubr.msk.bf16.vlgmr.msra.gmra.mxu1 %vm443_vm3, %v664_v13 }
 0x313   : > { %2143 = vmatpush3.bf16.msra.mxu1 %v731_v14  ;;  %2144 = vmatprep.mubr.msk.bf16.mxu1 %vm2392_vm2, %v2391_v29 }
 0x314   : > { %2148 = vmatprep.subr.bf16.mxu1 %v2391_v29 }
 0x3ca   : > { %v642_v15 = vpop.f32.mrf.mxu1 }
 0x3cb   : > { %v649_v24 = vsel %vm648_vm10, %v642_v15, -inf }
 0x3cc   : > { %v2134_v16 = vpop.f32.mrf.mxu1 }
 0x3ce   : > { %v645_v17 = vpop.f32.mrf.mxu1 }
 0x3cf   : > { %v1979_v17 = vld [vmem:[%s2844_s3 + $0xb] ss:$0 sm:$0xff] }
 0x3d0   : > { %v2135_v19 = vpop.f32.mrf.mxu1 }
 0x3d2   : > { %v702_v20 = vpop.f32.mrf.mxu1 }
 0x3d3   : > { %v708_v21 = vsel %vm648_vm10, %v702_v20, -inf }
 0x3d4   : > { %709 = vmax.xlane.f32.xlu1 %v708_v21  ;;  %v2140_v22 = vpop.f32.mrf.mxu1 }
 0x3d6   : > { %v705_v23 = vpop.f32.mrf.mxu1 }
 0x3d8   : > { %650 = vmax.xlane.f32.xlu1 %v649_v24  ;;  %v2141_v25 = vpop.f32.mrf.mxu1  ;;  %v2320_v24 = vld [vmem:[%s2842_s1 + $0xd8] sm:$0xff]  }
 0x3d9   : > { %v2321_v25 = vld [vmem:[%s2842_s1 + $0xd0] sm:$0xff]  }
 0x45d   : > { %v710_v26 = vpop.xlane.xlu1 %709 }
 0x45e   : > { %v711_v27 = vsub.f32 %v702_v20, %v710_v26  ;;  %v1980_v20 = vld [vmem:[%s2844_s3 + $0xc] ss:$0 sm:$0xff] }
 0x45f   : > { %v2322_v26 = vld [vmem:[%s2842_s1 + $0xc8] sm:$0xff]  }
 0x460   : > { %v712_v28 = vmul.f32 1.442695, %v711_v27  ;;  %v2323_v27 = vld [vmem:[%s2842_s1 + $0xc0] sm:$0xff]  }
 0x461   : > { %v651_v30 = vpop.xlane.xlu1 %650 }
 0x462   : > { %2350 = vpow2.f32 %v712_v28  ;;  %v652_v31 = vsub.f32 %v642_v15, %v651_v30  ;;  %v2324_v28 = vld [vmem:[%s2842_s1 + $0xb8] sm:$0xff]   ;;  %v2325_v30 = vld [vmem:[%s2842_s1 + $0xb0] sm:$0xff]  }
 0x464   : > { %v653_v32 = vmul.f32 1.442695, %v652_v31  ;;  %v2326_v31 = vld [vmem:[%s2842_s1 + $0xa8] sm:$0xff]  }
 0x466   : > { %2352 = vpow2.f32 %v653_v32  ;;  %v2327_v32 = vld [vmem:[%s2842_s1 + $0xa0] sm:$0xff]  }
 0x46f   : > { %v2351_v33 = vpop.eup %2350 }
 0x470   : > { %v714_v34 = vsel %vm648_vm10, %v2351_v33, 0.0 }
 0x471   : > { %715 = vadd.xlane.f32.xlu0 %v714_v34 }
 0x473   : > { %v2353_v35 = vpop.eup %2352 }
 0x474   : > { %v655_v36 = vsel %vm648_vm10, %v2353_v35, 0.0 }
 0x475   : > { %656 = vadd.xlane.f32.xlu1 %v655_v36 }
 0x4fa   : > { %v716_v37 = vpop.xlane.xlu0 %715 }
 0x4fb   : > { %2354 = vrcp.f32 %v716_v37 }
 0x4fe   : > { %v657_v38 = vpop.xlane.xlu1 %656 }
 0x4ff   : > { %2356 = vrcp.f32 %v657_v38 }
 0x508   : > { %v2355_v40 = vpop.eup %2354 }
 0x509   : > { %v718_v42 = vmul.f32 %v2355_v40, %v2351_v33  ;;  %v1981_v33 = vld [vmem:[%s2844_s3 + $0xd] ss:$0 sm:$0xff] }
 0x50b   : > { %v721_v43 = vpack.c.bf16 %v718_v42, %v718_v42 }
 0x50c   : > { %v2357_v44 = vpop.eup %2356 }
 0x50d   : > { %2145 = vmatmul.mubr.msk.bf16.vlgmr.msra.gmra.mxu1 %vm722_vm11, %v721_v43  ;;  %v659_v46 = vmul.f32 %v2357_v44, %v2353_v35 }
 0x50e   : > { %2149 = vmatpush3.bf16.msra.mxu1 %v777_v45  ;;  %2150 = vmatprep.mubr.msk.bf16.mxu1 %vm2392_vm2, %v2391_v29 }
 0x50f   : > { %2154 = vmatprep.subr.bf16.mxu1 %v2391_v29  ;;  %v662_v47 = vpack.c.bf16 %v659_v46, %v659_v46 }
 0x515   : > { %2151 = vmatmul.mubr.msk.bf16.vlgmr.msra.gmra.mxu1 %vm722_vm11, %v662_v47 }
 0x516   : > { %2158 = vmatprep.mubr.msk.bf16.mxu1 %vm2392_vm2, %v2391_v29  ;;  %2155 = vmatpush3.bf16.msra.mxu1 %v2316_v48 }
 0x517   : > { %2156 = vmatprep.subr.bf16.mxu1 %v2391_v29 }
 0x51a   : > { %2157 = vmatpush3.bf16.msra.mxu1 %v2317_v49  ;;  %v1993_v49 = vld [vmem:[%s2844_s3 + $0xe] ss:$0 sm:$0xff] }
 0x51b   : > { %2170 = vmatprep.subr.bf16.mxu1 %v2391_v29 }
 0x5cd   : > { %v767_v50 = vpop.f32.mrf.mxu1 }
 0x5cf   : > { %v2146_v51 = vpop.f32.mrf.mxu1 }
 0x5d1   : > { %v770_v52 = vpop.f32.mrf.mxu1 }
 0x5d3   : > { %v2147_v53 = vpop.f32.mrf.mxu1 }
 0x5d5   : > { %v813_v54 = vpop.f32.mrf.mxu1 }
 0x5d6   : > { %v814_v55 = vadd.f32 %v813_v54, %v767_v50 }
 0x5d7   : > { %v2152_v56 = vpop.f32.mrf.mxu1 }
 0x5d8   : > { %v819_v57 = vpack.c.bf16 %v814_v55, %v814_v55 }
 0x5d9   : > { %v816_v59 = vpop.f32.mrf.mxu1 }
 0x5da   : > { %2159 = vmatmul.mubr.msk.bf16.vlgmr.msra.gmra.mxu1 %vm443_vm3, %v819_v57 }
 0x5db   : > { %v2153_v60 = vpop.f32.mrf.mxu1  ;;  %2186 = vmatprep.mubr.msk.bf16.mxu1 %vm2392_vm2, %v2391_v29  ;;  %2171 = vmatpush3.bf16.msra.mxu1 %v2320_v24 }
 0x5dc   : > { %2172 = vmatprep.subr.bf16.mxu1 %v2391_v29 }
 0x5df   : > { %2173 = vmatpush3.bf16.msra.mxu1 %v2321_v25 }
 0x5e0   : > { %2174 = vmatprep.subr.bf16.mxu1 %v2391_v29 }
 0x5e3   : > { %2175 = vmatpush3.bf16.msra.mxu1 %v2322_v26 }
 0x5e4   : > { %2176 = vmatprep.subr.bf16.mxu1 %v2391_v29 }
 0x5e7   : > { %2177 = vmatpush3.bf16.msra.mxu1 %v2323_v27 }
 0x5e8   : > { %2178 = vmatprep.subr.bf16.mxu1 %v2391_v29 }
 0x5eb   : > { %2179 = vmatpush3.bf16.msra.mxu1 %v2324_v28 }
 0x5ec   : > { %2180 = vmatprep.subr.bf16.mxu1 %v2391_v29 }
 0x5ef   : > { %2181 = vmatpush3.bf16.msra.mxu1 %v2325_v30 }
 0x5f0   : > { %2182 = vmatprep.subr.bf16.mxu1 %v2391_v29 }
 0x5f3   : > { %2183 = vmatpush3.bf16.msra.mxu1 %v2326_v31 }
 0x5f4   : > { %2184 = vmatprep.subr.bf16.mxu1 %v2391_v29 }
 0x5f7   : > { %2185 = vmatpush3.bf16.msra.mxu1 %v2327_v32  ;;  %v2004_v32 = vld [vmem:[%s2844_s3 + $0x13] ss:$0 sm:$0xff] }
 0x5f8   : > { %2220 = vmatprep.subr.bf16.mxu1 %v2391_v29 }
 0x69a   : > { %v869_v62 = vpop.f32.mrf.mxu1 }
 0x69b   : > { %v875_v63 = vadd.f32 %v869_v62, %v2474_v18  ;;  %v2318_v18 = vld [vmem:[%s2843_s2 + $0x8] sm:$0xff]  }
 0x69c   : > { %v2160_v0 = vpop.f32.mrf.mxu1  ;;  %2163 = vmatpush3.bf16.msra.mxu0 %v2318_v18  ;;  %v2330_v18 = vld [vmem:[%s2842_s1 + $0xf8] sm:$0xff]  }
 0x69d   : > { %v2592_v1 = vadd.f32 %v1978_v61, %v875_v63  ;;  %2164 = vmatprep.subr.bf16.mxu0 %v2391_v29  ;;  %v2328_v63 = vld [vmem:[%s2842_s1 + $0xe8] sm:$0xff]   ;;  %v2329_v0 = vld [vmem:[%s2842_s1 + $0xe0] sm:$0xff]  }
 0x69e   : > { %v872_v2 = vpop.f32.mrf.mxu1 }
 0x69f   : > { %v881_v4 = vsel %vm401_vm1, %v2592_v1, 0.0 }
 0x6a0   : > { %882 = vadd.xlane.f32.xlu0 %v881_v4  ;;  %v2161_v5 = vpop.f32.mrf.mxu1  ;;  %2165 = vmatpush3.bf16.msra.mxu0 %v2319_v11 }
 0x6a1   : > { %2190 = vmatprep.subr.bf16.mxu0 %v2391_v29 }
 0x729   : > { %v883_v6 = vpop.xlane.xlu0 %882 }
 0x72a   : > { %v884_v7 = vmul.f32 0.03125, %v883_v6  ;;  %v1994_v6 = vld [vmem:[%s2844_s3 + $0xf] ss:$0 sm:$0xff] }
 0x72c   : > { %v885_v8 = vsub.f32 %v2592_v1, %v884_v7 }
 0x72e   : > { %v886_v9 = vmul.f32 %v885_v8, %v885_v8 }
 0x730   : > { %v887_v10 = vsel %vm401_vm1, %v886_v9, 0.0 }
 0x731   : > { %888 = vadd.xlane.f32.xlu1 %v887_v10 }
 0x7ba   : > { %v889_v13 = vpop.xlane.xlu1 %888 }
 0x7bb   : > { %v890_v14 = vmul.f32 0.03125, %v889_v13  ;;  %v2331_v13 = vld [vmem:[%s2842_s1 + $0xf0] sm:$0xff]  }
 0x7bd   : > { %v891_v15 = vadd.f32 1e-06, %v890_v14  ;;  %v2332_v14 = vld [vmem:[%s2842_s1 + $0x108] sm:$0xff]  }
 0x7bf   : > { %2358 = vrsqrt.f32 %v891_v15  ;;  %v2333_v15 = vld [vmem:[%s2842_s1 + $0x100] sm:$0xff]  }
 0x7cc   : > { %v2359_v16 = vpop.eup %2358 }
 0x7cd   : > { %v893_v19 = vmul.f32 %v2359_v16, %v885_v8  ;;  %v1995_v8 = vld [vmem:[%s2844_s3 + $0x10] ss:$0 sm:$0xff] }
 0x7cf   : > { %v898_v21 = vmul.f32 %v1979_v17, %v893_v19 }
 0x7d1   : > { %v903_v22 = vadd.f32 %v1980_v20, %v898_v21  ;;  %v2000_v21 = vld [vmem:[%s2844_s3 + $0x12] ss:$0 sm:$0xff] }
 0x7d3   : > { %v904_v23 = vpack.c.bf16 %v903_v22, %v903_v22  ;;  %v1996_v22 = vld [vmem:[%s2844_s3 + $0x11] ss:$0 sm:$0xff] }
 0x7d5   : > { %2167 = vmatmul.mubr.msk.bf16.vlgmr.msra.gmra.mxu0 %vm443_vm3, %v904_v23 }
 0x7d6   : > { %2194 = vmatprep.mubr.msk.bf16.mxu0 %vm2392_vm2, %v2391_v29  ;;  %2191 = vmatpush3.bf16.msra.mxu0 %v2328_v63 }
 0x7d7   : > { %2192 = vmatprep.subr.bf16.mxu0 %v2391_v29 }
 0x7da   : > { %2193 = vmatpush3.bf16.msra.mxu0 %v2329_v0 }
 0x7db   : > { %2198 = vmatprep.subr.bf16.mxu0 %v2391_v29 }
 0x895   : > { %v958_v34 = vpop.f32.mrf.mxu0 }
 0x896   : > { %v959_v35 = vadd.f32 %v1981_v33, %v958_v34 }
 0x897   : > { %v2168_v36 = vpop.f32.mrf.mxu0 }
 0x898   : > { %v964_v37 = vmul.f32 %v959_v35, %v959_v35 }
 0x899   : > { %v961_v38 = vpop.f32.mrf.mxu0 }
 0x89a   : > { %v965_v39 = vmul.f32 %v964_v37, %v959_v35 }
 0x89b   : > { %v2169_v40 = vpop.f32.mrf.mxu0 }
 0x89c   : > { %v966_v41 = vmul.f32 0.044715, %v965_v39 }
 0x89e   : > { %v967_v42 = vadd.f32 %v966_v41, %v959_v35 }
 0x8a0   : > { %v968_v43 = vmul.f32 0.7978846, %v967_v42 }
 0x8a2   : > { %2360 = vtanh.f32 %v968_v43 }
 0x8af   : > { %v2361_v44 = vpop.eup %2360 }
 0x8b0   : > { %v970_v45 = vadd.f32 1.0, %v2361_v44 }
 0x8b2   : > { %v971_v46 = vmul.f32 0.5, %v970_v45 }
 0x8b4   : > { %v972_v47 = vmul.f32 %v971_v46, %v959_v35 }
 0x8b6   : > { %v973_v48 = vpack.c.bf16 %v972_v47, %v972_v47 }
 0x8b8   : > { %2187 = vmatmul.mubr.bf16.vlgmr.msra.gmra.mxu1 %v973_v48 }
 0x8b9   : > { %2222 = vmatprep.mubr.msk.bf16.mxu1 %vm2392_vm2, %v2391_v29 }
 0x978   : > { %v1056_v50 = vpop.f32.mrf.mxu1 }
 0x979   : > { %v1062_v51 = vadd.f32 %v1056_v50, %v2592_v1 }
 0x97a   : > { %v2188_v52 = vpop.f32.mrf.mxu1 }
 0x97b   : > { %v2656_v53 = vadd.f32 %v1993_v49, %v1062_v51 }
 0x97c   : > { %v1059_v54 = vpop.f32.mrf.mxu1 }
 0x97d   : > { %v1114_v55 = vsel %vm401_vm1, %v2656_v53, 0.0 }
 0x97e   : > { %1115 = vadd.xlane.f32.xlu0 %v1114_v55  ;;  %v2189_v56 = vpop.f32.mrf.mxu1 }
 0xa07   : > { %v1116_v57 = vpop.xlane.xlu0 %1115 }
 0xa08   : > { %v1117_v59 = vmul.f32 0.03125, %v1116_v57 }
 0xa0a   : > { %v1118_v60 = vsub.f32 %v2656_v53, %v1117_v59 }
 0xa0c   : > { %v1119_v61 = vmul.f32 %v1118_v60, %v1118_v60 }
 0xa0e   : > { %v1120_v62 = vsel %vm401_vm1, %v1119_v61, 0.0 }
 0xa0f   : > { %1121 = vadd.xlane.f32.xlu1 %v1120_v62 }
 0xa98   : > { %v1122_v1 = vpop.xlane.xlu1 %1121 }
 0xa99   : > { %v1123_v2 = vmul.f32 0.03125, %v1122_v1 }
 0xa9b   : > { %v1124_v4 = vadd.f32 1e-06, %v1123_v2 }
 0xa9d   : > { %2362 = vrsqrt.f32 %v1124_v4 }
 0xaaa   : > { %v2363_v5 = vpop.eup %2362 }
 0xaab   : > { %v1126_v7 = vmul.f32 %v2363_v5, %v1118_v60 }
 0xaad   : > { %v1131_v9 = vmul.f32 %v1994_v6, %v1126_v7 }
 0xaaf   : > { %v1136_v10 = vadd.f32 %v1995_v8, %v1131_v9 }
 0xab1   : > { %v1137_v11 = vpack.c.bf16 %v1136_v10, %v1136_v10 }
 0xab3   : > { %2195 = vmatmul.mubr.msk.bf16.vlgmr.msra.gmra.mxu0 %vm443_vm3, %v1137_v11 }
 0xab4   : > { %2199 = vmatpush3.bf16.msra.mxu0 %v2330_v18  ;;  %2202 = vmatprep.mubr.msk.bf16.mxu0 %vm2392_vm2, %v2391_v29  ;;  %v2334_v18 = vld [vmem:[%s2842_s1 + $0x118] sm:$0xff]  }
 0xab5   : > { %2200 = vmatprep.subr.bf16.mxu0 %v2391_v29 }
 0xab8   : > { %2201 = vmatpush3.bf16.msra.mxu0 %v2331_v13  ;;  %v2335_v13 = vld [vmem:[%s2842_s1 + $0x110] sm:$0xff]  }
 0xab9   : > { %2206 = vmatprep.subr.bf16.mxu0 %v2391_v29 }
 0xabb   : > { %2203 = vmatmul.mubr.msk.bf16.vlgmr.msra.gmra.mxu0 %vm443_vm3, %v1137_v11 }
 0xabc   : > { %2207 = vmatpush3.bf16.msra.mxu0 %v2332_v14  ;;  %2210 = vmatprep.mubr.msk.bf16.mxu0 %vm2392_vm2, %v2391_v29 }
 0xabd   : > { %2208 = vmatprep.subr.bf16.mxu0 %v2391_v29 }
 0xac0   : > { %2209 = vmatpush3.bf16.msra.mxu0 %v2333_v15 }
 0xac1   : > { %2214 = vmatprep.subr.bf16.mxu0 %v2391_v29 }
 0xac3   : > { %2211 = vmatmul.mubr.msk.bf16.vlgmr.msra.gmra.mxu0 %vm443_vm3, %v1137_v11 }
 0xac4   : > { %2216 = vmatprep.mubr.msk.bf16.mxu0 %vm2392_vm2, %v2391_v29 }
 0xb73   : > { %v1191_v16 = vpop.f32.mrf.mxu0 }
 0xb74   : > { %v1192_v26 = vadd.f32 %v1996_v22, %v1191_v16 }
 0xb75   : > { %v2196_v17 = vpop.f32.mrf.mxu0 }
 0xb76   : > { %v1310_v33 = vmul.f32 %v2540_v58, %v1192_v26  ;;  %v1372_v34 = vmul.f32 %v2549_v3, %v1192_v26 }
 0xb77   : > { %v1194_v19 = vpop.f32.mrf.mxu0 }
 0xb78   : > { %v1311_v38 = vpack.c.bf16 %v1310_v33, %v1310_v33  ;;  %v1373_v39 = vpack.c.bf16 %v1372_v34, %v1372_v34 }
 0xb79   : > { %v2197_v20 = vpop.f32.mrf.mxu0 }
 0xb7b   : > { %v1247_v23 = vpop.f32.mrf.mxu0 }
 0xb7c   : > { %v1248_v24 = vadd.f32 %v2000_v21, %v1247_v23 }
 0xb7d   : > { %v2204_v25 = vpop.f32.mrf.mxu0 }
 0xb7e   : > { %v1309_v27 = vpack.c.bf16 %v1248_v24, %v1248_v24  ;;  %v2015_v25 = vld [vmem:[%s2844_s3 + $0x14] ss:$0 sm:$0xff] }
 0xb7f   : > { %v1250_v28 = vpop.f32.mrf.mxu0 }
 0xb80   : > { %v1316_v30 = vsel %vm443_vm3, %v1309_v27, 0 }
 0xb81   : > { %v2205_v31 = vpop.f32.mrf.mxu0  ;;  %2215 = vmatpush3.bf16.xpose.msra.mxu0 %v1316_v30  ;;  %2221 = vmatpush3.bf16.xpose.msra.mxu1 %v1316_v30 }
 0xb82   : > { %2226 = vmatprep.subr.bf16.mxu0 %v2391_v29  ;;  %2232 = vmatprep.subr.bf16.mxu1 %v2391_v29 }
 0xb83   : > { %v1303_v35 = vpop.f32.mrf.mxu0 }
 0xb84   : > { %v1304_v36 = vadd.f32 %v2004_v32, %v1303_v35 }
 0xb85   : > { %v2212_v37 = vpop.f32.mrf.mxu0 }
 0xb86   : > { %v1369_v40 = vmul.f32 %v2540_v58, %v1304_v36  ;;  %v1428_v41 = vmul.f32 %v2549_v3, %v1304_v36 }
 0xb87   : > { %v1306_v42 = vpop.f32.mrf.mxu0 }
 0xb88   : > { %v1370_v43 = vpack.c.bf16 %v1369_v40, %v1369_v40  ;;  %v1429_v44 = vpack.c.bf16 %v1428_v41, %v1428_v41  ;;  %2217 = vmatmul.mubr.msk.bf16.vlgmr.msra.gmra.mxu0 %vm443_vm3, %v1311_v38  ;;  %2223 = vmatmul.mubr.msk.bf16.vlgmr.msra.gmra.mxu1 %vm443_vm3, %v1373_v39  ;;  %v2337_v39 = vld [vmem:[%s2843_s2 + $0x10] sm:$0xff]  }
 0xb89   : > { %v2213_v45 = vpop.f32.mrf.mxu0  ;;  %2228 = vmatprep.mubr.msk.bf16.mxu0 %vm2392_vm2, %v2391_v29  ;;  %2234 = vmatprep.mubr.msk.bf16.mxu1 %vm2392_vm2, %v2391_v29 }
 0xb8a   : > { %v1435_v46 = vand.u32 %v1429_v44, %v2557_v12  ;;  %v1481_v58 = vand.u32 %v1370_v43, %v2557_v12  ;;  %v2016_v44 = vld [vmem:[%s2844_s3 + $0x15] ss:$0 sm:$0xff] }
 0xb8c   : > { %2227 = vmatpush3.bf16.msra.mxu0 %v1435_v46  ;;  %2233 = vmatpush3.bf16.msra.mxu1 %v1481_v58  ;;  %v2017_v46 = vld [vmem:[%s2844_s3 + $0x16] ss:$0 sm:$0xff] }
 0xb8d   : > { %2238 = vmatprep.subr.bf16.mxu0 %v2391_v29  ;;  %2246 = vmatprep.subr.bf16.mxu1 %v2391_v29 }
 0xc48   : > { %v1352_v3 = vpop.f32.mrf.mxu0  ;;  %v1411_v47 = vpop.f32.mrf.mxu1 }
 0xc49   : > { %v1358_v48 = vsel %vm648_vm10, %v1352_v3, -inf  ;;  %v1417_v49 = vsel %vm648_vm10, %v1411_v47, -inf }
 0xc4a   : > { %1359 = vmax.xlane.f32.xlu0 %v1358_v48  ;;  %v2218_v50 = vpop.f32.mrf.mxu0  ;;  %1418 = vmax.xlane.f32.xlu1 %v1417_v49  ;;  %v2224_v51 = vpop.f32.mrf.mxu1  ;;  %v2338_v48 = vld [vmem:[%s2842_s1 + $0x158] sm:$0xff]   ;;  %v2339_v49 = vld [vmem:[%s2842_s1 + $0x150] sm:$0xff]  }
 0xc4b   : > { %v2340_v50 = vld [vmem:[%s2842_s1 + $0x148] sm:$0xff]   ;;  %v2341_v51 = vld [vmem:[%s2842_s1 + $0x140] sm:$0xff]  }
 0xc4c   : > { %v1355_v52 = vpop.f32.mrf.mxu0  ;;  %v1414_v54 = vpop.f32.mrf.mxu1 }
 0xc4d   : > { %v2342_v52 = vld [vmem:[%s2842_s1 + $0x138] sm:$0xff]   ;;  %v2343_v54 = vld [vmem:[%s2842_s1 + $0x130] sm:$0xff]  }
 0xc4e   : > { %v2219_v55 = vpop.f32.mrf.mxu0  ;;  %v2225_v12 = vpop.f32.mrf.mxu1 }
 0xc4f   : > { %v2344_v55 = vld [vmem:[%s2842_s1 + $0x128] sm:$0xff]   ;;  %v2345_v12 = vld [vmem:[%s2842_s1 + $0x120] sm:$0xff]  }
 0xcd3   : > { %v1360_v56 = vpop.xlane.xlu0 %1359  ;;  %v1419_v57 = vpop.xlane.xlu1 %1418 }
 0xcd4   : > { %v1361_v59 = vsub.f32 %v1352_v3, %v1360_v56  ;;  %v1420_v60 = vsub.f32 %v1411_v47, %v1419_v57  ;;  %v2018_v56 = vld [vmem:[%s2844_s3 + $0x17] ss:$0 sm:$0xff] }
 0xcd6   : > { %v1362_v61 = vmul.f32 1.442695, %v1361_v59  ;;  %v1421_v62 = vmul.f32 1.442695, %v1420_v60 }
 0xcd8   : > { %2364 = vpow2.f32 %v1362_v61 }
 0xcd9   : > { %2366 = vpow2.f32 %v1421_v62 }
 0xce5   : > { %v2365_v63 = vpop.eup %2364 }
 0xce6   : > { %v2367_v0 = vpop.eup %2366  ;;  %v1364_v1 = vsel %vm648_vm10, %v2365_v63, 0.0 }
 0xce7   : > { %1365 = vadd.xlane.f32.xlu0 %v1364_v1  ;;  %v1423_v2 = vsel %vm648_vm10, %v2367_v0, 0.0 }
 0xce8   : > { %1424 = vadd.xlane.f32.xlu1 %v1423_v2 }
 0xd70   : > { %v1366_v4 = vpop.xlane.xlu0 %1365 }
 0xd71   : > { %2368 = vrcp.f32 %v1366_v4  ;;  %v1425_v5 = vpop.xlane.xlu1 %1424 }
 0xd72   : > { %2370 = vrcp.f32 %v1425_v5 }
 0xd7e   : > { %v2369_v6 = vpop.eup %2368 }
 0xd7f   : > { %v2371_v7 = vpop.eup %2370  ;;  %v1368_v8 = vmul.f32 %v2369_v6, %v2365_v63 }
 0xd80   : > { %v1427_v9 = vmul.f32 %v2371_v7, %v2367_v0 }
 0xd81   : > { %v1371_v10 = vpack.c.bf16 %v1368_v8, %v1368_v8 }
 0xd82   : > { %v1430_v11 = vpack.c.bf16 %v1427_v9, %v1427_v9 }
 0xd83   : > { %2235 = vmatmul.mubr.msk.bf16.vlgmr.msra.gmra.mxu1 %vm722_vm11, %v1371_v10 }
 0xd84   : > { %2229 = vmatmul.mubr.msk.bf16.vlgmr.msra.gmra.mxu0 %vm722_vm11, %v1430_v11  ;;  %2250 = vmatprep.mubr.msk.bf16.mxu1 %vm2392_vm2, %v2391_v29 }
 0xd85   : > { %2239 = vmatpush3.bf16.msra.mxu0 %v2334_v18  ;;  %2242 = vmatprep.mubr.msk.bf16.mxu0 %vm2392_vm2, %v2391_v29  ;;  %v2030_v18 = vld [vmem:[%s2844_s3 + $0x18] ss:$0 sm:$0xff] }
 0xd86   : > { %2240 = vmatprep.subr.bf16.mxu0 %v2391_v29 }
 0xd89   : > { %2241 = vmatpush3.bf16.msra.mxu0 %v2335_v13 }
 0xd8a   : > { %2254 = vmatprep.subr.bf16.mxu0 %v2391_v29 }
 0xe43   : > { %v1517_v14 = vpop.f32.mrf.mxu1 }
 0xe44   : > { %v1471_v15 = vpop.f32.mrf.mxu0 }
 0xe45   : > { %v1518_v16 = vadd.f32 %v1517_v14, %v1471_v15  ;;  %v2236_v17 = vpop.f32.mrf.mxu1 }
 0xe46   : > { %v2230_v19 = vpop.f32.mrf.mxu0 }
 0xe47   : > { %v1523_v20 = vpack.c.bf16 %v1518_v16, %v1518_v16  ;;  %v1520_v21 = vpop.f32.mrf.mxu1 }
 0xe48   : > { %v1474_v22 = vpop.f32.mrf.mxu0 }
 0xe49   : > { %2243 = vmatmul.mubr.msk.bf16.vlgmr.msra.gmra.mxu0 %vm443_vm3, %v1523_v20  ;;  %v2237_v23 = vpop.f32.mrf.mxu1 }
 0xe4a   : > { %v2231_v24 = vpop.f32.mrf.mxu0  ;;  %2270 = vmatprep.mubr.msk.bf16.mxu0 %vm2392_vm2, %v2391_v29  ;;  %2255 = vmatpush3.bf16.msra.mxu0 %v2338_v48 }
 0xe4b   : > { %2256 = vmatprep.subr.bf16.mxu0 %v2391_v29  ;;  %v2346_v24 = vld [vmem:[%s2842_s1 + $0x168] sm:$0xff]  }
 0xe4e   : > { %2257 = vmatpush3.bf16.msra.mxu0 %v2339_v49 }
 0xe4f   : > { %2258 = vmatprep.subr.bf16.mxu0 %v2391_v29 }
 0xe52   : > { %2259 = vmatpush3.bf16.msra.mxu0 %v2340_v50 }
 0xe53   : > { %2260 = vmatprep.subr.bf16.mxu0 %v2391_v29 }
 0xe56   : > { %2261 = vmatpush3.bf16.msra.mxu0 %v2341_v51 }
 0xe57   : > { %2262 = vmatprep.subr.bf16.mxu0 %v2391_v29 }
 0xe5a   : > { %2263 = vmatpush3.bf16.msra.mxu0 %v2342_v52 }
 0xe5b   : > { %2264 = vmatprep.subr.bf16.mxu0 %v2391_v29 }
 0xe5e   : > { %2265 = vmatpush3.bf16.msra.mxu0 %v2343_v54 }
 0xe5f   : > { %2266 = vmatprep.subr.bf16.mxu0 %v2391_v29 }
 0xe62   : > { %2267 = vmatpush3.bf16.msra.mxu0 %v2344_v55 }
 0xe63   : > { %2268 = vmatprep.subr.bf16.mxu0 %v2391_v29 }
 0xe66   : > { %2269 = vmatpush3.bf16.msra.mxu0 %v2345_v12 }
 0xf09   : > { %v1573_v26 = vpop.f32.mrf.mxu0 }
 0xf0a   : > { %v1579_v27 = vadd.f32 %v1573_v26, %v2656_v53  ;;  %v2336_v53 = vld [vmem:[%s2843_s2 + $0x18] sm:$0xff]  }
 0xf0b   : > { %v2244_v28 = vpop.f32.mrf.mxu0  ;;  %2247 = vmatpush3.bf16.msra.mxu1 %v2336_v53 }
 0xf0c   : > { %v2752_v30 = vadd.f32 %v2015_v25, %v1579_v27  ;;  %2248 = vmatprep.subr.bf16.mxu1 %v2391_v29  ;;  %v2347_v25 = vld [vmem:[%s2842_s1 + $0x160] sm:$0xff]  }
 0xf0d   : > { %v1576_v31 = vpop.f32.mrf.mxu0 }
 0xf0e   : > { %v1585_v32 = vsel %vm401_vm1, %v2752_v30, 0.0  ;;  %v2031_v31 = vld [vmem:[%s2844_s3 + $0x19] ss:$0 sm:$0xff] }
 0xf0f   : > { %1586 = vadd.xlane.f32.xlu0 %v1585_v32  ;;  %v2245_v33 = vpop.f32.mrf.mxu0  ;;  %2249 = vmatpush3.bf16.msra.mxu1 %v2337_v39 }
 0xf10   : > { %2274 = vmatprep.subr.bf16.mxu1 %v2391_v29  ;;  %v2032_v33 = vld [vmem:[%s2844_s3 + $0x1a] ss:$0 sm:$0xff] }
 0xf98   : > { %v1587_v34 = vpop.xlane.xlu0 %1586 }
 0xf99   : > { %v1588_v35 = vmul.f32 0.03125, %v1587_v34 }
 0xf9b   : > { %v1589_v36 = vsub.f32 %v2752_v30, %v1588_v35 }
 0xf9d   : > { %v1590_v37 = vmul.f32 %v1589_v36, %v1589_v36 }
 0xf9f   : > { %v1591_v38 = vsel %vm401_vm1, %v1590_v37, 0.0 }
 0xfa0   : > { %1592 = vadd.xlane.f32.xlu1 %v1591_v38  ;;  %v1803_v38 = vld [vmem:[%s2844_s3 + $0x1c] sm:$0x1] }
0x1029   : > { %v1593_v40 = vpop.xlane.xlu1 %1592 }
0x102a   : > { %v1594_v41 = vmul.f32 0.03125, %v1593_v40 }
0x102c   : > { %v1595_v42 = vadd.f32 1e-06, %v1594_v41 }
0x102e   : > { %2372 = vrsqrt.f32 %v1595_v42 }
0x103b   : > { %v2373_v43 = vpop.eup %2372 }
0x103c   : > { %v1597_v45 = vmul.f32 %v2373_v43, %v1589_v36 }
0x103e   : > { %v1602_v58 = vmul.f32 %v2016_v44, %v1597_v45 }
0x1040   : > { %v1607_v3 = vadd.f32 %v2017_v46, %v1602_v58 }
0x1042   : > { %v1608_v47 = vpack.c.bf16 %v1607_v3, %v1607_v3 }
0x1044   : > { %2251 = vmatmul.mubr.msk.bf16.vlgmr.msra.gmra.mxu1 %vm443_vm3, %v1608_v47 }
0x1045   : > { %2278 = vmatprep.mubr.msk.bf16.mxu1 %vm2392_vm2, %v2391_v29  ;;  %2275 = vmatpush3.bf16.msra.mxu1 %v2346_v24 }
0x1046   : > { %2276 = vmatprep.subr.bf16.mxu1 %v2391_v29  ;;  %v1797_v29 = vld [vmem:[%s2844_s3 + $0x1b] sm:$0x1] }
0x1049   : > { %2277 = vmatpush3.bf16.msra.mxu1 %v2347_v25 }
0x1104   : > { %v1662_v57 = vpop.f32.mrf.mxu1 }
0x1105   : > { %v1663_v59 = vadd.f32 %v2018_v56, %v1662_v57 }
0x1106   : > { %v2252_v60 = vpop.f32.mrf.mxu1 }
0x1107   : > { %v1668_v61 = vmul.f32 %v1663_v59, %v1663_v59 }
0x1108   : > { %v1665_v62 = vpop.f32.mrf.mxu1 }
0x1109   : > { %v1669_v63 = vmul.f32 %v1668_v61, %v1663_v59 }
0x110a   : > { %v2253_v0 = vpop.f32.mrf.mxu1 }
0x110b   : > { %v1670_v1 = vmul.f32 0.044715, %v1669_v63 }
0x110d   : > { %v1671_v2 = vadd.f32 %v1670_v1, %v1663_v59 }
0x110f   : > { %v1672_v4 = vmul.f32 0.7978846, %v1671_v2 }
0x1111   : > { %2374 = vtanh.f32 %v1672_v4 }
0x111e   : > { %v2375_v5 = vpop.eup %2374 }
0x111f   : > { %v1674_v6 = vadd.f32 1.0, %v2375_v5 }
0x1121   : > { %v1675_v7 = vmul.f32 0.5, %v1674_v6 }
0x1123   : > { %v1676_v8 = vmul.f32 %v1675_v7, %v1663_v59 }
0x1125   : > { %v1677_v9 = vpack.c.bf16 %v1676_v8, %v1676_v8 }
0x1127   : > { %2271 = vmatmul.mubr.bf16.vlgmr.msra.gmra.mxu0 %v1677_v9 }
0x11e7   : > { %v1760_v10 = vpop.f32.mrf.mxu0 }
0x11e8   : > { %v1766_v11 = vadd.f32 %v1760_v10, %v2752_v30 }
0x11e9   : > { %v2272_v13 = vpop.f32.mrf.mxu0 }
0x11ea   : > { %v1771_v14 = vadd.f32 %v2030_v18, %v1766_v11 }
0x11eb   : > { %v1763_v15 = vpop.f32.mrf.mxu0 }
0x11ec   : > { %v1774_v16 = vsel %vm401_vm1, %v1771_v14, 0.0 }
0x11ed   : > { %1775 = vadd.xlane.f32.xlu0 %v1774_v16  ;;  %v2273_v17 = vpop.f32.mrf.mxu0 }
0x1276   : > { %v1776_v19 = vpop.xlane.xlu0 %1775 }
0x1277   : > { %v1777_v20 = vmul.f32 0.03125, %v1776_v19 }
0x1279   : > { %v1778_v21 = vsub.f32 %v1771_v14, %v1777_v20 }
0x127b   : > { %v1779_v22 = vmul.f32 %v1778_v21, %v1778_v21 }
0x127d   : > { %v1780_v23 = vsel %vm401_vm1, %v1779_v22, 0.0 }
0x127e   : > { %1781 = vadd.xlane.f32.xlu1 %v1780_v23 }
0x1307   : > { %v1782_v26 = vpop.xlane.xlu1 %1781 }
0x1308   : > { %v1783_v27 = vmul.f32 0.03125, %v1782_v26 }
0x130a   : > { %v1784_v28 = vadd.f32 1e-06, %v1783_v27 }
0x130c   : > { %2376 = vrsqrt.f32 %v1784_v28 }
0x1319   : > { %v2377_v30 = vpop.eup %2376 }
0x131a   : > { %v1786_v32 = vmul.f32 %v2377_v30, %v1778_v21 }
0x131c   : > { %v1791_v34 = vmul.f32 %v2031_v31, %v1786_v32 }
0x131e   : > { %v1796_v35 = vadd.f32 %v2032_v33, %v1791_v34 }
0x1320   : > { %v1798_v36 = vmul.f32 %v1797_v29, %v1796_v35 }
0x1322   : > { %v1804_v37 = vpack.c.bf16 %v1798_v36, %v1798_v36 }
0x1324   : > { %2279 = vmatmul.mubr.msk.bf16.vlgmr.msra.gmra.mxu1 %vm443_vm3, %v1804_v37 }
0x13e4   : > { %v1854_v53 = vpop.f32.mrf.mxu1 }
0x13e5   : > { %v1855_v39 = vadd.f32 %v1854_v53, %v1803_v38 }
0x13e6   : > { %v2280_v40 = vpop.f32.mrf.mxu1 }
0x13e7   : > { %v1861_v41 = vsel %vm1860_vm12, %v1855_v39, -inf  ;;  %1873 = vst.msk [vmem:[%s2484_s25] sm:$0x1] %vm1860_vm12, %v1855_v39 }
0x13e8   : > { %1862 = vmax.xlane.f32.xlu0 %v1861_v41  ;;  %v1857_v42 = vpop.f32.mrf.mxu1 }
0x13ea   : > { %v2281_v43 = vpop.f32.mrf.mxu1 }
0x1471   : > { %v1863_v44 = vpop.xlane.xlu0 %1862 }
0x1472   : > { %v1864_v45 = vsub.f32 %v1855_v39, %v1863_v44 }
0x1474   : > { %v1865_v46 = vmul.f32 1.442695, %v1864_v45 }
0x1476   : > { %2378 = vpow2.f32 %v1865_v46 }
0x1483   : > { %v2379_v58 = vpop.eup %2378 }
0x1484   : > { %v1867_v3 = vsel %vm1860_vm12, %v2379_v58, 0.0 }
0x1485   : > { %1868 = vadd.xlane.f32.xlu1 %v1867_v3 }
0x1496   : > { %1881 = vrot.lane.b32.xlu1 %v1798_v36, %s2394_s16 }
0x150e   : > { %v1869_v47 = vpop.xlane.xlu1 %1868 }
0x150f   : > { %2380 = vrcp.f32 %v1869_v47 }
0x1512   : > { %v1882_v51 = vpop.permute.xlu1 %1881 }
0x151c   : > { %v2381_v48 = vpop.eup %2380 }
0x151d   : > { %v1871_v49 = vmul.f32 %v2381_v48, %v2379_v58 }
0x151f   : > { %1875 = vrot.lane.b32.xlu0 %v1871_v49, %s2395_s30 }
0x1591   : > { %v1876_v50 = vpop.permute.xlu0 %1875 }
0x1592   : > { %1879 = vst.msk [vmem:[%s2484_s25] sm:$0x1] %vm1878_vm13, %v1876_v50 }
0x1593   : > { %1885 = vst.msk [vmem:[%s2484_s25] sm:$0x1] %vm1884_vm14, %v1882_v51 }
0x1594 PF: > { %s14_s15 = sadd.s32 1, %s2388_s15  }
0x1595   : > { %p11_p4 = scmp.ge.s32.totalorder %s14_s15, 4  }
0x1597   :  { %13 = sbr.rel (!%p11_p4) target bundleno = 1 (0x1), region = 66 }

</bundles_post_ra>
